<compile_context>
chip_gen: v7x
topology: tpu7x:2x2x1
jax: 0.10.0
libtpu: 0.0.40
codegen_flags: <defaults>
</compile_context>

<pallas_src>
import functools

import jax
import jax.numpy as jnp
from jax.experimental import pallas as pl
from jax.experimental.pallas import tpu as pltpu

LANE = 128     # lane tile: all four gates packed into one lane tile (needs 4*H <= GP)
SUBLANE = 8    # batch padded to a sublane multiple


def _round_up(x, m):
    return ((x + m - 1) // m) * m


def lstm_linear_kernel(x_ref, wih_ref, whh_ref, b_ref, w2_ref, b2_ref,
                       y_ref, xw_ref, *, hidden_size):
    # x_ref  : (S*Bp, I)   time-major input, batch padded to Bp sublanes
    # wih_ref: (I, GP)     gates (i|f|o|g) packed at lane offsets (0,H,2H,3H), rest 0
    # whh_ref: (GP, GP)    rows >= H are zero (kills padded-lane junk in h)
    # b_ref  : (1, GP)     b_ih + b_hh, packed like wih
    # w2_ref : (S*GP, OP)  final Linear; per-step block t has rows >= H zeroed
    # b2_ref : (1, OP)
    # y_ref  : (Bp, OP)    lane-dense padded output
    # xw_ref : (S*Bp, GP)  scratch: hoisted input projection
    H = hidden_size
    GP = whh_ref.shape[0]
    Bp, OP = y_ref.shape
    S = x_ref.shape[0] // Bp

    # (1) Hoist the input projection (+ bias) out of the recurrence: one MXU matmul.
    xw_ref[...] = (
        jnp.dot(x_ref[...], wih_ref[...], preferred_element_type=jnp.float32)
        + b_ref[...]
    )

    # (2) Load W_hh once; reused as the matmul RHS across all S serial steps.
    whh = whh_ref[...]

    # Sigmoid over the contiguous i|f|o lanes, tanh over g AND over the zero padding
    # (so padded lanes of `act` stay exactly 0).
    lane = jax.lax.broadcasted_iota(jnp.int32, (Bp, GP), 1)
    sig_mask = lane < 3 * H

    h = jnp.zeros((Bp, GP), jnp.float32)
    c = jnp.zeros((Bp, GP), jnp.float32)
    y_acc = jnp.zeros((Bp, OP), jnp.float32)

    # Serial recurrence; S is small & static -> fully unrolled.
    # TODO(synk): for large S, switch to lax.fori_loop(unroll=2-4) carrying (h,c,y_acc)
    # and chunk the hoisted projection over S (bounds VMEM on v7x's 64 MiB).
    for t in range(S):
        # Single (Bp,GP) x (GP,GP) MXU tile per step (was 4 tiles before packing).
        gates = xw_ref[t * Bp:(t + 1) * Bp, :] + jnp.dot(
            h, whh, preferred_element_type=jnp.float32)
        act = jnp.where(sig_mask, jax.nn.sigmoid(gates), jnp.tanh(gates))
        # Align f/o/g sub-blocks onto the c/h lanes [0:H) via XLU rotations.
        f_al = pltpu.roll(act, GP - H, axis=1)
        o_al = pltpu.roll(act, GP - 2 * H, axis=1)
        g_al = pltpu.roll(act, GP - 3 * H, axis=1)
        c = f_al * c + act * g_al          # `act` already has i at lanes [0:H)
        h = o_al * jnp.tanh(c)
        # (3) Per-step Linear accumulation: off the recurrence chain, overlaps the
        # next step's h @ W_hh. Zero rows (>= H) in this w2 block kill padded junk.
        y_acc = y_acc + jnp.dot(h, w2_ref[t * GP:(t + 1) * GP, :],
                                preferred_element_type=jnp.float32)

    y_ref[...] = y_acc + b2_ref[...]


def _pack_gates(w, H, GP):
    """w: (4H, K) in PyTorch gate order (i, f, g, o).
    Returns (K, GP): gates reordered to (i, f, o, g) and packed contiguously at lane
    offsets (0, H, 2H, 3H); lanes >= 4H are zero."""
    K = w.shape[1]
    wi, wf, wg, wo = w[0:H], w[H:2 * H], w[2 * H:3 * H], w[3 * H:4 * H]
    out = jnp.zeros((GP, K), jnp.float32)
    for k, blk in enumerate((wi, wf, wo, wg)):
        out = out.at[k * H:(k + 1) * H].set(blk.astype(jnp.float32))
    return out.T


@jax.jit
def lstm_forward(x, w_ih, w_hh, b_ih, b_hh, w2, b2):
    """x: (S, B, I) float32.  Returns (B, output_size)."""
    S, B, I = x.shape
    H = w_hh.shape[1]               # w_hh: (4H, H)
    O = w2.shape[0]                 # w2:   (O, S*H)
    GP = _round_up(4 * H, LANE)     # one lane tile holds all four gates (H <= 32 here)
    OP = _round_up(O, LANE)         # lane-dense output
    Bp = _round_up(B, SUBLANE)

    # Layout prep in the wrapper (plain XLA, outside the hot kernel).
    x_p = jnp.zeros((S, Bp, I), jnp.float32).at[:, :B, :].set(x.astype(jnp.float32))
    x2d = x_p.reshape(S * Bp, I)

    wih_p = _pack_gates(jnp.asarray(w_ih, jnp.float32), H, GP)             # (I, GP)
    whh_r = _pack_gates(jnp.asarray(w_hh, jnp.float32), H, GP)             # (H, GP)
    whh_p = jnp.zeros((GP, GP), jnp.float32).at[:H, :].set(whh_r)          # (GP, GP)
    bias = (b_ih + b_hh).astype(jnp.float32).reshape(4 * H, 1)
    bias_p = _pack_gates(bias, H, GP)                                      # (1, GP)

    # Final Linear weight: (O, S*H) -> (S*GP, OP); per-step rows >= H and cols >= O are
    # zero, so the per-step accumulation equals transpose(0,1).view(b, s*h) @ W2^T + b2.
    w2_r = jnp.asarray(w2, jnp.float32).reshape(O, S, H)
    w2_p = jnp.zeros((S, GP, OP), jnp.float32).at[:, :H, :O].set(
        jnp.transpose(w2_r, (1, 2, 0)))
    w2_p = w2_p.reshape(S * GP, OP)
    b2_p = jnp.zeros((1, OP), jnp.float32).at[0, :O].set(
        jnp.asarray(b2, jnp.float32))

    vmem = pl.BlockSpec(memory_space=pltpu.MemorySpace.VMEM)
    y_p = pl.pallas_call(
        functools.partial(lstm_linear_kernel, hidden_size=H),
        out_shape=jax.ShapeDtypeStruct((Bp, OP), jnp.float32),
        in_specs=[vmem] * 6,
        out_specs=vmem,
        scratch_shapes=[
            pltpu.VMEM((S * Bp, GP), jnp.float32),   # hoisted x @ W_ih + bias
        ],
        compiler_params=pltpu.CompilerParams(
            vmem_limit_bytes=32 * 1024 * 1024),      # safe on v5e/v6e/v7x at this size
    )(x2d, wih_p, whh_p, bias_p, w2_p, b2_p)
    return y_p[:B, :O]


def lstm_forward_ref(x, w_ih, w_hh, b_ih, b_hh, w2, b2):
    """Pure-JAX reference matching PyTorch nn.LSTM + Linear semantics."""
    S, B, I = x.shape
    H = w_hh.shape[1]

    def step(carry, xt):
        h, c = carry
        gates = xt @ w_ih.T + h @ w_hh.T + b_ih + b_hh
        i_g = jax.nn.sigmoid(gates[:, 0:H])
        f_g = jax.nn.sigmoid(gates[:, H:2 * H])
        g_g = jnp.tanh(gates[:, 2 * H:3 * H])
        o_g = jax.nn.sigmoid(gates[:, 3 * H:4 * H])
        c = f_g * c + i_g * g_g
        h = o_g * jnp.tanh(c)
        return (h, c), h

    h0 = jnp.zeros((B, H), jnp.float32)
    c0 = jnp.zeros((B, H), jnp.float32)
    _, hs = jax.lax.scan(step, (h0, c0), x)                 # (S, B, H)
    flat = jnp.transpose(hs, (1, 0, 2)).reshape(B, S * H)   # == transpose(0,1).view(b, s*h)
    return flat @ w2.T + b2


if __name__ == "__main__":
    # Module hyperparameters (forward requires seq_length * hidden_size == Linear in_features)
    input_size, hidden_size, output_size, seq_length = 12, 4, 1, 8
    batch = 2

    key = jax.random.PRNGKey(0)
    ks = jax.random.split(key, 8)
    k = 1.0 / jnp.sqrt(hidden_size)

    # Deterministic PyTorch-style uniform(-1/sqrt(H), 1/sqrt(H)) init
    w_ih = jax.random.uniform(ks[0], (4 * hidden_size, input_size), jnp.float32, -k, k)
    w_hh = jax.random.uniform(ks[1], (4 * hidden_size, hidden_size), jnp.float32, -k, k)
    b_ih = jax.random.uniform(ks[2], (4 * hidden_size,), jnp.float32, -k, k)
    b_hh = jax.random.uniform(ks[3], (4 * hidden_size,), jnp.float32, -k, k)
    kl = 1.0 / jnp.sqrt(hidden_size * seq_length)
    w2 = jax.random.uniform(ks[4], (output_size, hidden_size * seq_length), jnp.float32, -kl, kl)
    b2 = jax.random.uniform(ks[5], (output_size,), jnp.float32, -kl, kl)

    # Input x: (seq, batch, input_size) -- synthetic stand-in for the one-hot hour features.
    # TODO(synk): OneHotEncoder / np.load('./data/hour.npy') preprocessing is host-side and
    # has no Pallas equivalent; inputs are synthesized in-script.
    x = jax.random.normal(ks[6], (seq_length, batch, input_size), jnp.float32)

    y = lstm_forward(x, w_ih, w_hh, b_ih, b_hh, w2, b2)
    jax.block_until_ready(y)

    y_ref = lstm_forward_ref(x, w_ih, w_hh, b_ih, b_hh, w2, b2)
    assert y.shape == (batch, output_size)
    assert jnp.allclose(y, y_ref, atol=1e-5, rtol=1e-5), (y, y_ref)

    print("KERNEL_OK")
</pallas_src>

<mosaic_0001>
module attributes {stable_mosaic.version = 11 : i64} {
  func.func @lstm_linear_kernel(%arg0: memref<64x12xf32, #tpu.memory_space<vmem>>, %arg1: memref<12x128xf32, #tpu.memory_space<vmem>>, %arg2: memref<128x128xf32, #tpu.memory_space<vmem>>, %arg3: memref<1x128xf32, #tpu.memory_space<vmem>>, %arg4: memref<1024x128xf32, #tpu.memory_space<vmem>>, %arg5: memref<1x128xf32, #tpu.memory_space<vmem>>, %arg6: memref<8x128xf32, #tpu.memory_space<vmem>>, %arg7: memref<64x128xf32, #tpu.memory_space<vmem>>) attributes {dimension_semantics = [], scalar_prefetch = 0 : i64, scratch_operands = 1 : i64, tpu.core_type = #tpu.core_type<tc>} {
    %c0 = arith.constant 0 : index
    %c0_0 = arith.constant 0 : index
    %0 = vector.load %arg0[%c0, %c0_0] : memref<64x12xf32, #tpu.memory_space<vmem>>, vector<64x12xf32>
    %c0_1 = arith.constant 0 : index
    %c0_2 = arith.constant 0 : index
    %1 = vector.load %arg1[%c0_1, %c0_2] : memref<12x128xf32, #tpu.memory_space<vmem>>, vector<12x128xf32>
    %cst = arith.constant dense<0.000000e+00> : vector<64x128xf32>
    %2 = tpu.matmul %0, %1, %cst {dimension_numbers = #tpu.dot_dimension_numbers<[1], [0], [0], [1], [0, 0, 1, 1], [], []>} : vector<64x12xf32>, vector<12x128xf32>, vector<64x128xf32> -> vector<64x128xf32>
    %c0_3 = arith.constant 0 : index
    %c0_4 = arith.constant 0 : index
    %3 = vector.load %arg3[%c0_3, %c0_4] : memref<1x128xf32, #tpu.memory_space<vmem>>, vector<1x128xf32>
    %4 = vector.broadcast %3 : vector<1x128xf32> to vector<64x128xf32>
    %5 = arith.addf %2, %4 : vector<64x128xf32>
    %c0_5 = arith.constant 0 : index
    %c0_6 = arith.constant 0 : index
    %6 = vector.load %arg7[%c0_5, %c0_6] : memref<64x128xf32, #tpu.memory_space<vmem>>, vector<64x128xf32>
    tpu.vector_store %arg7[%c0_5, %c0_6], %5 {strides = array<i32>} : memref<64x128xf32, #tpu.memory_space<vmem>>, vector<64x128xf32>,
    %c0_7 = arith.constant 0 : index
    %c0_8 = arith.constant 0 : index
    %7 = vector.load %arg2[%c0_7, %c0_8] : memref<128x128xf32, #tpu.memory_space<vmem>>, vector<128x128xf32>
    %8 = tpu.iota {dimensions = array<i32: 1>} : vector<8x128xi32>
    %c12_i32 = arith.constant 12 : i32
    %9 = vector.broadcast %c12_i32 : i32 to vector<8x128xi32>
    %10 = arith.cmpi slt, %8, %9 : vector<8x128xi32>
    %cst_9 = arith.constant 0.000000e+00 : f32
    %11 = vector.broadcast %cst_9 : f32 to vector<8x128xf32>
    %cst_10 = arith.constant 0.000000e+00 : f32
    %12 = vector.broadcast %cst_10 : f32 to vector<8x128xf32>
    %cst_11 = arith.constant 0.000000e+00 : f32
    %13 = vector.broadcast %cst_11 : f32 to vector<8x128xf32>
    %c0_12 = arith.constant 0 : index
    %c0_13 = arith.constant 0 : index
    %14 = vector.load %arg7[%c0_12, %c0_13] : memref<64x128xf32, #tpu.memory_space<vmem>>, vector<8x128xf32>
    %cst_14 = arith.constant dense<0.000000e+00> : vector<8x128xf32>
    %15 = tpu.matmul %11, %7, %cst_14 {dimension_numbers = #tpu.dot_dimension_numbers<[1], [0], [0], [1], [0, 0, 1, 1], [], []>} : vector<8x128xf32>, vector<128x128xf32>, vector<8x128xf32> -> vector<8x128xf32>
    %16 = arith.addf %14, %15 : vector<8x128xf32>
    %17 = arith.negf %16 : vector<8x128xf32>
    %18 = math.exp %17 : vector<8x128xf32>
    %cst_15 = arith.constant 1.000000e+00 : f32
    %19 = vector.broadcast %cst_15 : f32 to vector<8x128xf32>
    %20 = arith.addf %19, %18 : vector<8x128xf32>
    %21 = arith.divf %19, %20 : vector<8x128xf32>
    %22 = math.tanh %16 : vector<8x128xf32>
    %23 = arith.select %10, %21, %22 : vector<8x128xi1>, vector<8x128xf32>
    %c124_i32 = arith.constant 124 : i32
    %24 = tpu.dynamic_rotate %23 by %c124_i32 dim 1 : vector<8x128xf32>, i32 -> vector<8x128xf32>
    %c120_i32 = arith.constant 120 : i32
    %25 = tpu.dynamic_rotate %23 by %c120_i32 dim 1 : vector<8x128xf32>, i32 -> vector<8x128xf32>
    %c116_i32 = arith.constant 116 : i32
    %26 = tpu.dynamic_rotate %23 by %c116_i32 dim 1 : vector<8x128xf32>, i32 -> vector<8x128xf32>
    %27 = arith.mulf %24, %12 : vector<8x128xf32>
    %28 = arith.mulf %23, %26 : vector<8x128xf32>
    %29 = arith.addf %27, %28 : vector<8x128xf32>
    %30 = math.tanh %29 : vector<8x128xf32>
    %31 = arith.mulf %25, %30 : vector<8x128xf32>
    %c0_16 = arith.constant 0 : index
    %c0_17 = arith.constant 0 : index
    %32 = vector.load %arg4[%c0_16, %c0_17] : memref<1024x128xf32, #tpu.memory_space<vmem>>, vector<128x128xf32>
    %cst_18 = arith.constant dense<0.000000e+00> : vector<8x128xf32>
    %33 = tpu.matmul %31, %32, %cst_18 {dimension_numbers = #tpu.dot_dimension_numbers<[1], [0], [0], [1], [0, 0, 1, 1], [], []>} : vector<8x128xf32>, vector<128x128xf32>, vector<8x128xf32> -> vector<8x128xf32>
    %34 = arith.addf %13, %33 : vector<8x128xf32>
    %c8 = arith.constant 8 : index
    %c0_19 = arith.constant 0 : index
    %35 = vector.load %arg7[%c8, %c0_19] : memref<64x128xf32, #tpu.memory_space<vmem>>, vector<8x128xf32>
    %cst_20 = arith.constant dense<0.000000e+00> : vector<8x128xf32>
    %36 = tpu.matmul %31, %7, %cst_20 {dimension_numbers = #tpu.dot_dimension_numbers<[1], [0], [0], [1], [0, 0, 1, 1], [], []>} : vector<8x128xf32>, vector<128x128xf32>, vector<8x128xf32> -> vector<8x128xf32>
    %37 = arith.addf %35, %36 : vector<8x128xf32>
    %38 = arith.negf %37 : vector<8x128xf32>
    %39 = math.exp %38 : vector<8x128xf32>
    %cst_21 = arith.constant 1.000000e+00 : f32
    %40 = vector.broadcast %cst_21 : f32 to vector<8x128xf32>
    %41 = arith.addf %40, %39 : vector<8x128xf32>
    %42 = arith.divf %40, %41 : vector<8x128xf32>
    %43 = math.tanh %37 : vector<8x128xf32>
    %44 = arith.select %10, %42, %43 : vector<8x128xi1>, vector<8x128xf32>
    %c124_i32_22 = arith.constant 124 : i32
    %45 = tpu.dynamic_rotate %44 by %c124_i32_22 dim 1 : vector<8x128xf32>, i32 -> vector<8x128xf32>
    %c120_i32_23 = arith.constant 120 : i32
    %46 = tpu.dynamic_rotate %44 by %c120_i32_23 dim 1 : vector<8x128xf32>, i32 -> vector<8x128xf32>
    %c116_i32_24 = arith.constant 116 : i32
    %47 = tpu.dynamic_rotate %44 by %c116_i32_24 dim 1 : vector<8x128xf32>, i32 -> vector<8x128xf32>
    %48 = arith.mulf %45, %29 : vector<8x128xf32>
    %49 = arith.mulf %44, %47 : vector<8x128xf32>
    %50 = arith.addf %48, %49 : vector<8x128xf32>
    %51 = math.tanh %50 : vector<8x128xf32>
    %52 = arith.mulf %46, %51 : vector<8x128xf32>
    %c128 = arith.constant 128 : index
    %c0_25 = arith.constant 0 : index
    %53 = vector.load %arg4[%c128, %c0_25] : memref<1024x128xf32, #tpu.memory_space<vmem>>, vector<128x128xf32>
    %cst_26 = arith.constant dense<0.000000e+00> : vector<8x128xf32>
    %54 = tpu.matmul %52, %53, %cst_26 {dimension_numbers = #tpu.dot_dimension_numbers<[1], [0], [0], [1], [0, 0, 1, 1], [], []>} : vector<8x128xf32>, vector<128x128xf32>, vector<8x128xf32> -> vector<8x128xf32>
    %55 = arith.addf %34, %54 : vector<8x128xf32>
    %c16 = arith.constant 16 : index
    %c0_27 = arith.constant 0 : index
    %56 = vector.load %arg7[%c16, %c0_27] : memref<64x128xf32, #tpu.memory_space<vmem>>, vector<8x128xf32>
    %cst_28 = arith.constant dense<0.000000e+00> : vector<8x128xf32>
    %57 = tpu.matmul %52, %7, %cst_28 {dimension_numbers = #tpu.dot_dimension_numbers<[1], [0], [0], [1], [0, 0, 1, 1], [], []>} : vector<8x128xf32>, vector<128x128xf32>, vector<8x128xf32> -> vector<8x128xf32>
    %58 = arith.addf %56, %57 : vector<8x128xf32>
    %59 = arith.negf %58 : vector<8x128xf32>
    %60 = math.exp %59 : vector<8x128xf32>
    %cst_29 = arith.constant 1.000000e+00 : f32
    %61 = vector.broadcast %cst_29 : f32 to vector<8x128xf32>
    %62 = arith.addf %61, %60 : vector<8x128xf32>
    %63 = arith.divf %61, %62 : vector<8x128xf32>
    %64 = math.tanh %58 : vector<8x128xf32>
    %65 = arith.select %10, %63, %64 : vector<8x128xi1>, vector<8x128xf32>
    %c124_i32_30 = arith.constant 124 : i32
    %66 = tpu.dynamic_rotate %65 by %c124_i32_30 dim 1 : vector<8x128xf32>, i32 -> vector<8x128xf32>
    %c120_i32_31 = arith.constant 120 : i32
    %67 = tpu.dynamic_rotate %65 by %c120_i32_31 dim 1 : vector<8x128xf32>, i32 -> vector<8x128xf32>
    %c116_i32_32 = arith.constant 116 : i32
    %68 = tpu.dynamic_rotate %65 by %c116_i32_32 dim 1 : vector<8x128xf32>, i32 -> vector<8x128xf32>
    %69 = arith.mulf %66, %50 : vector<8x128xf32>
    %70 = arith.mulf %65, %68 : vector<8x128xf32>
    %71 = arith.addf %69, %70 : vector<8x128xf32>
    %72 = math.tanh %71 : vector<8x128xf32>
    %73 = arith.mulf %67, %72 : vector<8x128xf32>
    %c256 = arith.constant 256 : index
    %c0_33 = arith.constant 0 : index
    %74 = vector.load %arg4[%c256, %c0_33] : memref<1024x128xf32, #tpu.memory_space<vmem>>, vector<128x128xf32>
    %cst_34 = arith.constant dense<0.000000e+00> : vector<8x128xf32>
    %75 = tpu.matmul %73, %74, %cst_34 {dimension_numbers = #tpu.dot_dimension_numbers<[1], [0], [0], [1], [0, 0, 1, 1], [], []>} : vector<8x128xf32>, vector<128x128xf32>, vector<8x128xf32> -> vector<8x128xf32>
    %76 = arith.addf %55, %75 : vector<8x128xf32>
    %c24 = arith.constant 24 : index
    %c0_35 = arith.constant 0 : index
    %77 = vector.load %arg7[%c24, %c0_35] : memref<64x128xf32, #tpu.memory_space<vmem>>, vector<8x128xf32>
    %cst_36 = arith.constant dense<0.000000e+00> : vector<8x128xf32>
    %78 = tpu.matmul %73, %7, %cst_36 {dimension_numbers = #tpu.dot_dimension_numbers<[1], [0], [0], [1], [0, 0, 1, 1], [], []>} : vector<8x128xf32>, vector<128x128xf32>, vector<8x128xf32> -> vector<8x128xf32>
    %79 = arith.addf %77, %78 : vector<8x128xf32>
    %80 = arith.negf %79 : vector<8x128xf32>
    %81 = math.exp %80 : vector<8x128xf32>
    %cst_37 = arith.constant 1.000000e+00 : f32
    %82 = vector.broadcast %cst_37 : f32 to vector<8x128xf32>
    %83 = arith.addf %82, %81 : vector<8x128xf32>
    %84 = arith.divf %82, %83 : vector<8x128xf32>
    %85 = math.tanh %79 : vector<8x128xf32>
    %86 = arith.select %10, %84, %85 : vector<8x128xi1>, vector<8x128xf32>
    %c124_i32_38 = arith.constant 124 : i32
    %87 = tpu.dynamic_rotate %86 by %c124_i32_38 dim 1 : vector<8x128xf32>, i32 -> vector<8x128xf32>
    %c120_i32_39 = arith.constant 120 : i32
    %88 = tpu.dynamic_rotate %86 by %c120_i32_39 dim 1 : vector<8x128xf32>, i32 -> vector<8x128xf32>
    %c116_i32_40 = arith.constant 116 : i32
    %89 = tpu.dynamic_rotate %86 by %c116_i32_40 dim 1 : vector<8x128xf32>, i32 -> vector<8x128xf32>
    %90 = arith.mulf %87, %71 : vector<8x128xf32>
    %91 = arith.mulf %86, %89 : vector<8x128xf32>
    %92 = arith.addf %90, %91 : vector<8x128xf32>
    %93 = math.tanh %92 : vector<8x128xf32>
    %94 = arith.mulf %88, %93 : vector<8x128xf32>
    %c384 = arith.constant 384 : index
    %c0_41 = arith.constant 0 : index
    %95 = vector.load %arg4[%c384, %c0_41] : memref<1024x128xf32, #tpu.memory_space<vmem>>, vector<128x128xf32>
    %cst_42 = arith.constant dense<0.000000e+00> : vector<8x128xf32>
    %96 = tpu.matmul %94, %95, %cst_42 {dimension_numbers = #tpu.dot_dimension_numbers<[1], [0], [0], [1], [0, 0, 1, 1], [], []>} : vector<8x128xf32>, vector<128x128xf32>, vector<8x128xf32> -> vector<8x128xf32>
    %97 = arith.addf %76, %96 : vector<8x128xf32>
    %c32 = arith.constant 32 : index
    %c0_43 = arith.constant 0 : index
    %98 = vector.load %arg7[%c32, %c0_43] : memref<64x128xf32, #tpu.memory_space<vmem>>, vector<8x128xf32>
    %cst_44 = arith.constant dense<0.000000e+00> : vector<8x128xf32>
    %99 = tpu.matmul %94, %7, %cst_44 {dimension_numbers = #tpu.dot_dimension_numbers<[1], [0], [0], [1], [0, 0, 1, 1], [], []>} : vector<8x128xf32>, vector<128x128xf32>, vector<8x128xf32> -> vector<8x128xf32>
    %100 = arith.addf %98, %99 : vector<8x128xf32>
    %101 = arith.negf %100 : vector<8x128xf32>
    %102 = math.exp %101 : vector<8x128xf32>
    %cst_45 = arith.constant 1.000000e+00 : f32
    %103 = vector.broadcast %cst_45 : f32 to vector<8x128xf32>
    %104 = arith.addf %103, %102 : vector<8x128xf32>
    %105 = arith.divf %103, %104 : vector<8x128xf32>
    %106 = math.tanh %100 : vector<8x128xf32>
    %107 = arith.select %10, %105, %106 : vector<8x128xi1>, vector<8x128xf32>
    %c124_i32_46 = arith.constant 124 : i32
    %108 = tpu.dynamic_rotate %107 by %c124_i32_46 dim 1 : vector<8x128xf32>, i32 -> vector<8x128xf32>
    %c120_i32_47 = arith.constant 120 : i32
    %109 = tpu.dynamic_rotate %107 by %c120_i32_47 dim 1 : vector<8x128xf32>, i32 -> vector<8x128xf32>
    %c116_i32_48 = arith.constant 116 : i32
    %110 = tpu.dynamic_rotate %107 by %c116_i32_48 dim 1 : vector<8x128xf32>, i32 -> vector<8x128xf32>
    %111 = arith.mulf %108, %92 : vector<8x128xf32>
    %112 = arith.mulf %107, %110 : vector<8x128xf32>
    %113 = arith.addf %111, %112 : vector<8x128xf32>
    %114 = math.tanh %113 : vector<8x128xf32>
    %115 = arith.mulf %109, %114 : vector<8x128xf32>
    %c512 = arith.constant 512 : index
    %c0_49 = arith.constant 0 : index
    %116 = vector.load %arg4[%c512, %c0_49] : memref<1024x128xf32, #tpu.memory_space<vmem>>, vector<128x128xf32>
    %cst_50 = arith.constant dense<0.000000e+00> : vector<8x128xf32>
    %117 = tpu.matmul %115, %116, %cst_50 {dimension_numbers = #tpu.dot_dimension_numbers<[1], [0], [0], [1], [0, 0, 1, 1], [], []>} : vector<8x128xf32>, vector<128x128xf32>, vector<8x128xf32> -> vector<8x128xf32>
    %118 = arith.addf %97, %117 : vector<8x128xf32>
    %c40 = arith.constant 40 : index
    %c0_51 = arith.constant 0 : index
    %119 = vector.load %arg7[%c40, %c0_51] : memref<64x128xf32, #tpu.memory_space<vmem>>, vector<8x128xf32>
    %cst_52 = arith.constant dense<0.000000e+00> : vector<8x128xf32>
    %120 = tpu.matmul %115, %7, %cst_52 {dimension_numbers = #tpu.dot_dimension_numbers<[1], [0], [0], [1], [0, 0, 1, 1], [], []>} : vector<8x128xf32>, vector<128x128xf32>, vector<8x128xf32> -> vector<8x128xf32>
    %121 = arith.addf %119, %120 : vector<8x128xf32>
    %122 = arith.negf %121 : vector<8x128xf32>
    %123 = math.exp %122 : vector<8x128xf32>
    %cst_53 = arith.constant 1.000000e+00 : f32
    %124 = vector.broadcast %cst_53 : f32 to vector<8x128xf32>
    %125 = arith.addf %124, %123 : vector<8x128xf32>
    %126 = arith.divf %124, %125 : vector<8x128xf32>
    %127 = math.tanh %121 : vector<8x128xf32>
    %128 = arith.select %10, %126, %127 : vector<8x128xi1>, vector<8x128xf32>
    %c124_i32_54 = arith.constant 124 : i32
    %129 = tpu.dynamic_rotate %128 by %c124_i32_54 dim 1 : vector<8x128xf32>, i32 -> vector<8x128xf32>
    %c120_i32_55 = arith.constant 120 : i32
    %130 = tpu.dynamic_rotate %128 by %c120_i32_55 dim 1 : vector<8x128xf32>, i32 -> vector<8x128xf32>
    %c116_i32_56 = arith.constant 116 : i32
    %131 = tpu.dynamic_rotate %128 by %c116_i32_56 dim 1 : vector<8x128xf32>, i32 -> vector<8x128xf32>
    %132 = arith.mulf %129, %113 : vector<8x128xf32>
    %133 = arith.mulf %128, %131 : vector<8x128xf32>
    %134 = arith.addf %132, %133 : vector<8x128xf32>
    %135 = math.tanh %134 : vector<8x128xf32>
    %136 = arith.mulf %130, %135 : vector<8x128xf32>
    %c640 = arith.constant 640 : index
    %c0_57 = arith.constant 0 : index
    %137 = vector.load %arg4[%c640, %c0_57] : memref<1024x128xf32, #tpu.memory_space<vmem>>, vector<128x128xf32>
    %cst_58 = arith.constant dense<0.000000e+00> : vector<8x128xf32>
    %138 = tpu.matmul %136, %137, %cst_58 {dimension_numbers = #tpu.dot_dimension_numbers<[1], [0], [0], [1], [0, 0, 1, 1], [], []>} : vector<8x128xf32>, vector<128x128xf32>, vector<8x128xf32> -> vector<8x128xf32>
    %139 = arith.addf %118, %138 : vector<8x128xf32>
    %c48 = arith.constant 48 : index
    %c0_59 = arith.constant 0 : index
    %140 = vector.load %arg7[%c48, %c0_59] : memref<64x128xf32, #tpu.memory_space<vmem>>, vector<8x128xf32>
    %cst_60 = arith.constant dense<0.000000e+00> : vector<8x128xf32>
    %141 = tpu.matmul %136, %7, %cst_60 {dimension_numbers = #tpu.dot_dimension_numbers<[1], [0], [0], [1], [0, 0, 1, 1], [], []>} : vector<8x128xf32>, vector<128x128xf32>, vector<8x128xf32> -> vector<8x128xf32>
    %142 = arith.addf %140, %141 : vector<8x128xf32>
    %143 = arith.negf %142 : vector<8x128xf32>
    %144 = math.exp %143 : vector<8x128xf32>
    %cst_61 = arith.constant 1.000000e+00 : f32
    %145 = vector.broadcast %cst_61 : f32 to vector<8x128xf32>
    %146 = arith.addf %145, %144 : vector<8x128xf32>
    %147 = arith.divf %145, %146 : vector<8x128xf32>
    %148 = math.tanh %142 : vector<8x128xf32>
    %149 = arith.select %10, %147, %148 : vector<8x128xi1>, vector<8x128xf32>
    %c124_i32_62 = arith.constant 124 : i32
    %150 = tpu.dynamic_rotate %149 by %c124_i32_62 dim 1 : vector<8x128xf32>, i32 -> vector<8x128xf32>
    %c120_i32_63 = arith.constant 120 : i32
    %151 = tpu.dynamic_rotate %149 by %c120_i32_63 dim 1 : vector<8x128xf32>, i32 -> vector<8x128xf32>
    %c116_i32_64 = arith.constant 116 : i32
    %152 = tpu.dynamic_rotate %149 by %c116_i32_64 dim 1 : vector<8x128xf32>, i32 -> vector<8x128xf32>
    %153 = arith.mulf %150, %134 : vector<8x128xf32>
    %154 = arith.mulf %149, %152 : vector<8x128xf32>
    %155 = arith.addf %153, %154 : vector<8x128xf32>
    %156 = math.tanh %155 : vector<8x128xf32>
    %157 = arith.mulf %151, %156 : vector<8x128xf32>
    %c768 = arith.constant 768 : index
    %c0_65 = arith.constant 0 : index
    %158 = vector.load %arg4[%c768, %c0_65] : memref<1024x128xf32, #tpu.memory_space<vmem>>, vector<128x128xf32>
    %cst_66 = arith.constant dense<0.000000e+00> : vector<8x128xf32>
    %159 = tpu.matmul %157, %158, %cst_66 {dimension_numbers = #tpu.dot_dimension_numbers<[1], [0], [0], [1], [0, 0, 1, 1], [], []>} : vector<8x128xf32>, vector<128x128xf32>, vector<8x128xf32> -> vector<8x128xf32>
    %160 = arith.addf %139, %159 : vector<8x128xf32>
    %c56 = arith.constant 56 : index
    %c0_67 = arith.constant 0 : index
    %161 = vector.load %arg7[%c56, %c0_67] : memref<64x128xf32, #tpu.memory_space<vmem>>, vector<8x128xf32>
    %cst_68 = arith.constant dense<0.000000e+00> : vector<8x128xf32>
    %162 = tpu.matmul %157, %7, %cst_68 {dimension_numbers = #tpu.dot_dimension_numbers<[1], [0], [0], [1], [0, 0, 1, 1], [], []>} : vector<8x128xf32>, vector<128x128xf32>, vector<8x128xf32> -> vector<8x128xf32>
    %163 = arith.addf %161, %162 : vector<8x128xf32>
    %164 = arith.negf %163 : vector<8x128xf32>
    %165 = math.exp %164 : vector<8x128xf32>
    %cst_69 = arith.constant 1.000000e+00 : f32
    %166 = vector.broadcast %cst_69 : f32 to vector<8x128xf32>
    %167 = arith.addf %166, %165 : vector<8x128xf32>
    %168 = arith.divf %166, %167 : vector<8x128xf32>
    %169 = math.tanh %163 : vector<8x128xf32>
    %170 = arith.select %10, %168, %169 : vector<8x128xi1>, vector<8x128xf32>
    %c124_i32_70 = arith.constant 124 : i32
    %171 = tpu.dynamic_rotate %170 by %c124_i32_70 dim 1 : vector<8x128xf32>, i32 -> vector<8x128xf32>
    %c120_i32_71 = arith.constant 120 : i32
    %172 = tpu.dynamic_rotate %170 by %c120_i32_71 dim 1 : vector<8x128xf32>, i32 -> vector<8x128xf32>
    %c116_i32_72 = arith.constant 116 : i32
    %173 = tpu.dynamic_rotate %170 by %c116_i32_72 dim 1 : vector<8x128xf32>, i32 -> vector<8x128xf32>
    %174 = arith.mulf %171, %155 : vector<8x128xf32>
    %175 = arith.mulf %170, %173 : vector<8x128xf32>
    %176 = arith.addf %174, %175 : vector<8x128xf32>
    %177 = math.tanh %176 : vector<8x128xf32>
    %178 = arith.mulf %172, %177 : vector<8x128xf32>
    %c896 = arith.constant 896 : index
    %c0_73 = arith.constant 0 : index
    %179 = vector.load %arg4[%c896, %c0_73] : memref<1024x128xf32, #tpu.memory_space<vmem>>, vector<128x128xf32>
    %cst_74 = arith.constant dense<0.000000e+00> : vector<8x128xf32>
    %180 = tpu.matmul %178, %179, %cst_74 {dimension_numbers = #tpu.dot_dimension_numbers<[1], [0], [0], [1], [0, 0, 1, 1], [], []>} : vector<8x128xf32>, vector<128x128xf32>, vector<8x128xf32> -> vector<8x128xf32>
    %181 = arith.addf %160, %180 : vector<8x128xf32>
    %c0_75 = arith.constant 0 : index
    %c0_76 = arith.constant 0 : index
    %182 = vector.load %arg5[%c0_75, %c0_76] : memref<1x128xf32, #tpu.memory_space<vmem>>, vector<1x128xf32>
    %183 = vector.broadcast %182 : vector<1x128xf32> to vector<8x128xf32>
    %184 = arith.addf %181, %183 : vector<8x128xf32>
    %c0_77 = arith.constant 0 : index
    %c0_78 = arith.constant 0 : index
    %185 = vector.load %arg6[%c0_77, %c0_78] : memref<8x128xf32, #tpu.memory_space<vmem>>, vector<8x128xf32>
    tpu.vector_store %arg6[%c0_77, %c0_78], %184 {strides = array<i32>} : memref<8x128xf32, #tpu.memory_space<vmem>>, vector<8x128xf32>,
    return
  }
}

</mosaic_0001>

<bundles_post_ra>
// kernel: lstm_forward.1
= control target key start
LH: loop header
LB: loop body
LE: loop exit
PB: predicated region body
PF: predicated region fallthrough
CT: control target
= control target key end

     0   :  { %v2975_v0 = vmov 0.0|0.0   ;;  %vm65_vm0 = vcmask 1043456   ;;  %vm2976_vm1 = vmmov 0   ;;  %v2977_v6 = vmov 0.0   ;;  %s2979_s22 = smov 120   ;;  %s2980_s23 = smov 124   ;;  %s3862_s2 = inlined_call_operand.vmem [shape: f32[128,128], index: 2, kind: input, shape index: {}]   ;;  %s3863_s1 = inlined_call_operand.vmem [shape: f32[12,128], index: 1, kind: input, shape index: {}]   ;;  %s3864_s0 = inlined_call_operand.vmem [shape: f32[64,12], index: 0, kind: input, shape index: {}]   ;;  %s3865_s3 = inlined_call_operand.vmem [shape: f32[1,128], index: 3, kind: input, shape index: {}]   ;;  %s3866_s4 = inlined_call_operand.vmem [shape: f32[1024,128], index: 4, kind: input, shape index: {}]   ;;  %s3867_s5 = inlined_call_operand.vmem [shape: f32[1,128], index: 5, kind: input, shape index: {}]   ;;  %s3868_s6 = inlined_call_operand.vmem [shape: f32[8,128], index: 6, kind: output, shape index: {}]  }
   0x1   :  { %2519 = vmatprep.subr.bf16.mxu1 %v2975_v0  ;;  %v182_v1 = vld [vmem:[%s3862_s2] sm:$0xff]  ;;  %v183_v2 = vld [vmem:[%s3862_s2 + $0x8] sm:$0xff]  ;;  %v184_v3 = vld [vmem:[%s3862_s2 + $0x10] sm:$0xff]  ;;  %1985 = vmatprep.mubr.msk.f32.mxu1 %vm2976_vm1, %v2977_v6  ;;  %vm40_vm2 = vcmask 97280   ;;  %vm2978_vm3 = vmmov 1   ;;  %v198_v41 = vlaneseq  ;;  %s2981_s26 = smov 116  }
   0x2   :  { %v3027_v4 = vpack.c.bf16 %v183_v2, %v182_v1  ;;  %v185_v5 = vld [vmem:[%s3862_s2 + $0x18] sm:$0xff]  ;;  %v186_v8 = vld [vmem:[%s3862_s2 + $0x20] sm:$0xff]  ;;  %v187_v9 = vld [vmem:[%s3862_s2 + $0x28] sm:$0xff] }
   0x3   :  { %v3035_v7 = vpack.c.bf16 %v185_v5, %v184_v3  ;;  %v31_v10 = vld [vmem:[%s3863_s1] sm:$0xff]  ;;  %v32_v11 = vld [vmem:[%s3863_s1 + $0x8] sm:$0xf]  ;;  %vm2514_vm4 = vmpackc.low %vm65_vm0, %vm2978_vm3  ;;  %v3055_v14 = vpack.c.bf16 %v187_v9, %v186_v8  ;;  %v3142_v42 = vand.u32 127, %v198_v41 }
   0x4   :  { %2521 = vmatpush3.bf16.msra.mxu1 %v3027_v4  ;;  %v2513_v12 = vpack.c.bf16 %v32_v11, %v31_v10  ;;  %v23_v13 = vld [vmem:[%s3864_s0] sm:$0xff]  ;;  %v188_v15 = vld [vmem:[%s3862_s2 + $0x30] sm:$0xff]  ;;  %v189_v16 = vld [vmem:[%s3862_s2 + $0x38] sm:$0xff] }
   0x5   :  { %2522 = vmatprep.subr.bf16.mxu1 %v2975_v0  ;;  %1941 = vmatprep.mubr.msk.f32.mxu0 %vm40_vm2, %v23_v13  ;;  %v24_v17 = vld [vmem:[%s3864_s0 + $0x8] sm:$0xff]  ;;  %v3069_v18 = vpack.c.bf16 %v189_v16, %v188_v15  ;;  %v190_v19 = vld [vmem:[%s3862_s2 + $0x40] sm:$0xff]  ;;  %v192_v22 = vld [vmem:[%s3862_s2 + $0x50] sm:$0xff]  ;;  %vm200_vm5 = vcmp.lt.s32.totalorder %v3142_v42, 12 }
   0x6   :  { %2515 = vmatprep.subr.msk.bf16.mxu0 %vm2514_vm4, %v2513_v12  ;;  %v191_v20 = vld [vmem:[%s3862_s2 + $0x48] sm:$0xff]  ;;  %v193_v23 = vld [vmem:[%s3862_s2 + $0x58] sm:$0xff]  ;;  %v194_v25 = vld [vmem:[%s3862_s2 + $0x60] sm:$0xff] }
   0x7   :  { %2518 = vmatpush3.bf16.msk.msra.mxu0 %vm2514_vm4, %v2513_v12  ;;  %v3082_v21 = vpack.c.bf16 %v191_v20, %v190_v19  ;;  %v3094_v24 = vpack.c.bf16 %v193_v23, %v192_v22  ;;  %v195_v26 = vld [vmem:[%s3862_s2 + $0x68] sm:$0xff]  ;;  %v196_v28 = vld [vmem:[%s3862_s2 + $0x70] sm:$0xff]  ;;  %v197_v29 = vld [vmem:[%s3862_s2 + $0x78] sm:$0xff] }
   0x8   :  { %2524 = vmatpush3.bf16.msra.mxu1 %v3035_v7  ;;  %2543 = vmatprep.subr.bf16.mxu0 %v2975_v0  ;;  %v3106_v27 = vpack.c.bf16 %v195_v26, %v194_v25  ;;  %v3118_v30 = vpack.c.bf16 %v197_v29, %v196_v28  ;;  %v3139_v33 = vld [vmem:[%s3865_s3] ss:$0 sm:$0xff]  ;;  %v25_v43 = vld [vmem:[%s3864_s0 + $0x10] sm:$0xff]  ;;  %v26_v44 = vld [vmem:[%s3864_s0 + $0x18] sm:$0xff] }
   0x9   :  { %2525 = vmatprep.subr.bf16.mxu1 %v2975_v0  ;;  %v27_v45 = vld [vmem:[%s3864_s0 + $0x20] sm:$0xff]  ;;  %v28_v46 = vld [vmem:[%s3864_s0 + $0x28] sm:$0xff]  ;;  %v29_v49 = vld [vmem:[%s3864_s0 + $0x30] sm:$0xff] }
   0xa   :  { %1942 = vmatmul.mubr.msk.f32.vlgmr.msra.gmra.mrb[0].mxu0 %vm40_vm2, %v24_v17  ;;  %v30_v51 = vld [vmem:[%s3864_s0 + $0x38] sm:$0xff]  ;;  %v292_v57 = vld [vmem:[%s3866_s4] sm:$0xff]  ;;  %v293_v58 = vld [vmem:[%s3866_s4 + $0x8] sm:$0xff] }
   0xb   :  { %2545 = vmatpush3.bf16.msra.mxu0 %v3027_v4  ;;  %1944 = vmatprep.mubr.msk.f32.mxu0 %vm40_vm2, %v25_v43  ;;  %v2592_v61 = vpack.c.bf16 %v293_v58, %v292_v57  ;;  %v294_v63 = vld [vmem:[%s3866_s4 + $0x10] sm:$0xff]  ;;  %v295_v1 = vld [vmem:[%s3866_s4 + $0x18] sm:$0xff]  ;;  %v296_v3 = vld [vmem:[%s3866_s4 + $0x20] sm:$0xff] }
   0xc   :  { %2527 = vmatpush3.bf16.msra.mxu1 %v3055_v14  ;;  %2546 = vmatprep.subr.bf16.mxu0 %v2975_v0  ;;  %v2595_v2 = vpack.c.bf16 %v295_v1, %v294_v63  ;;  %v297_v5 = vld [vmem:[%s3866_s4 + $0x28] sm:$0xff]  ;;  %v298_v9 = vld [vmem:[%s3866_s4 + $0x30] sm:$0xff]  ;;  %v299_v10 = vld [vmem:[%s3866_s4 + $0x38] sm:$0xff] }
   0xd   :  { %2528 = vmatprep.subr.bf16.mxu1 %v2975_v0  ;;  %v2598_v8 = vpack.c.bf16 %v297_v5, %v296_v3  ;;  %v2601_v11 = vpack.c.bf16 %v299_v10, %v298_v9  ;;  %v300_v12 = vld [vmem:[%s3866_s4 + $0x40] sm:$0xff]  ;;  %v301_v13 = vld [vmem:[%s3866_s4 + $0x48] sm:$0xff]  ;;  %v302_v16 = vld [vmem:[%s3866_s4 + $0x50] sm:$0xff] }
   0xe   :  { %1945 = vmatmul.mubr.msk.f32.gmra.mrb[2].mxu0 %vm40_vm2, %v26_v44  ;;  %v2604_v15 = vpack.c.bf16 %v301_v13, %v300_v12  ;;  %v303_v17 = vld [vmem:[%s3866_s4 + $0x58] sm:$0xff]  ;;  %v304_v20 = vld [vmem:[%s3866_s4 + $0x60] sm:$0xff]  ;;  %v305_v22 = vld [vmem:[%s3866_s4 + $0x68] sm:$0xff] }
   0xf   :  { %2548 = vmatpush3.bf16.msra.mxu0 %v3035_v7  ;;  %1947 = vmatprep.mubr.msk.f32.mxu0 %vm40_vm2, %v27_v45  ;;  %v2607_v19 = vpack.c.bf16 %v303_v17, %v302_v16  ;;  %v2610_v23 = vpack.c.bf16 %v305_v22, %v304_v20  ;;  %v306_v25 = vld [vmem:[%s3866_s4 + $0x70] sm:$0xff]  ;;  %v307_v26 = vld [vmem:[%s3866_s4 + $0x78] sm:$0xff]  ;;  %v403_v45 = vld [vmem:[%s3866_s4 + $0xa0] sm:$0xff] }
  0x10   :  { %2530 = vmatpush3.bf16.msra.mxu1 %v3069_v18  ;;  %2549 = vmatprep.subr.bf16.mxu0 %v2975_v0  ;;  %v2613_v28 = vpack.c.bf16 %v307_v26, %v306_v25  ;;  %v402_v43 = vld [vmem:[%s3866_s4 + $0x98] sm:$0xff]  ;;  %v411_v1 = vld [vmem:[%s3866_s4 + $0xe0] sm:$0xff]  ;;  %v413_v9 = vld [vmem:[%s3866_s4 + $0xf0] sm:$0xff] }
  0x11   :  { %2531 = vmatprep.subr.bf16.mxu1 %v2975_v0  ;;  %v414_v10 = vld [vmem:[%s3866_s4 + $0xf8] sm:$0xff] }
  0x12   :  { %1948 = vmatmul.mubr.msk.f32.gmra.mrb[4].mxu0 %vm40_vm2, %v28_v46  ;;  %v404_v46 = vld [vmem:[%s3866_s4 + $0xa8] sm:$0xff]  ;;  %v2589_v12 = vpack.c.bf16 %v414_v10, %v413_v9  ;;  %v660_v9 = vld [vmem:[%s3866_s4 + $0x170] sm:$0xff]  ;;  %v661_v10 = vld [vmem:[%s3866_s4 + $0x178] sm:$0xff] }
  0x13   :  { %2551 = vmatpush3.bf16.msra.mxu0 %v3055_v14  ;;  %1950 = vmatprep.mubr.msk.f32.mxu0 %vm40_vm2, %v29_v49  ;;  %v406_v49 = vld [vmem:[%s3866_s4 + $0xb8] sm:$0xff] }
  0x14   :  { %2533 = vmatpush3.bf16.msra.mxu1 %v3082_v21  ;;  %2552 = vmatprep.subr.bf16.mxu0 %v2975_v0 }
  0x15   :  { %2534 = vmatprep.subr.bf16.mxu1 %v2975_v0 }
  0x16   :  { %1951 = vmatmul.mubr.msk.f32.gmra.mrb[6].mxu0 %vm40_vm2, %v30_v51 }
  0x17   :  { %2554 = vmatpush3.bf16.msra.mxu0 %v3069_v18  ;;  %2020 = vmatprep.mubr.msk.f32.mxu0 %vm2976_vm1, %v2977_v6 }
  0x18   :  { %2536 = vmatpush3.bf16.msra.mxu1 %v3094_v24  ;;  %2555 = vmatprep.subr.bf16.mxu0 %v2975_v0 }
  0x19   :  { %2537 = vmatprep.subr.bf16.mxu1 %v2975_v0 }
  0x1b   :  { %2557 = vmatpush3.bf16.msra.mxu0 %v3082_v21 }
  0x1c   :  { %2539 = vmatpush3.bf16.msra.mxu1 %v3106_v27  ;;  %2558 = vmatprep.subr.bf16.mxu0 %v2975_v0 }
  0x1d   :  { %2540 = vmatprep.subr.bf16.mxu1 %v2975_v0 }
  0x1f   :  { %2560 = vmatpush3.bf16.msra.mxu0 %v3094_v24 }
  0x20   :  { %2542 = vmatpush3.bf16.msra.mxu1 %v3118_v30  ;;  %2561 = vmatprep.subr.bf16.mxu0 %v2975_v0 }
  0x21   :  { %2567 = vmatprep.subr.bf16.mxu1 %v2975_v0 }
  0x23   :  { %1986 = vmatmul.mubr.f32.vlgmr.msra.gmra.mrb[0].mxu1 %v2977_v6  ;;  %2563 = vmatpush3.bf16.msra.mxu0 %v3106_v27 }
  0x24   :  { %2055 = vmatprep.mubr.msk.f32.mxu1 %vm2976_vm1, %v2977_v6  ;;  %2564 = vmatprep.subr.bf16.mxu0 %v2975_v0 }
  0x27   :  { %2566 = vmatpush3.bf16.msra.mxu0 %v3118_v30 }
  0x28   :  { %2591 = vmatprep.subr.bf16.mxu0 %v2975_v0 }
  0xdd   :  { %v3134_v31 = vpop.f32.mrb[0].mxu0 }
  0xde   :  { %v135_v32 = vpop.f32.mrb[1].mxu0  ;;  %v141_v51 = vadd.f32 %v3134_v31, %v3139_v33  ;;  %v409_v31 = vld [vmem:[%s3866_s4 + $0xd0] sm:$0xff] }
  0xdf   :  { %v136_v34 = vadd.f32 %v3139_v33, %v135_v32 }
  0xe1   :  { %v3239_v29 = vpop.f32.mrb[2].mxu0 }
  0xe2   :  { %v3241_v32 = vpop.f32.mrb[3].mxu0 }
  0xf6   :  { %v268_v35 = vpop.f32.mrb[0].mxu1 }
  0xf7   :  { %v272_v36 = vadd.f32 %v268_v35, %v136_v34  ;;  %v1987_v37 = vpop.f32.mrb[1].mxu1  ;;  %v3243_v34 = vpop.f32.mrb[4].mxu0 }
  0xf8   :  { %v3245_v35 = vpop.f32.mrb[5].mxu0 }
  0xf9   :  { %v1646_v38 = vmul.f32 -1.442695, %v272_v36 }
  0xfb   :  { %2910 = vpow2.f32 %v1646_v38  ;;  %v399_v38 = vld [vmem:[%s3866_s4 + $0x80] sm:$0xff] }
  0xfc   :  { %2912 = vtanh.f32 %v272_v36  ;;  %v3247_v36 = vpop.f32.mrb[6].mxu0 }
  0xfd   :  { %v3249_v37 = vpop.f32.mrb[7].mxu0 }
 0x105   :  { %v2911_v39 = vpop.eup %2910 }
 0x106   :  { %v276_v40 = vadd.f32 1.0, %v2911_v39  ;;  %v2913_v47 = vpop.eup %2912  ;;  %v400_v39 = vld [vmem:[%s3866_s4 + $0x88] sm:$0xff] }
 0x107   :  { %v2568_v41 = vpack.c.bf16 %v400_v39, %v399_v38  ;;  %v648_v38 = vld [vmem:[%s3866_s4 + $0x110] sm:$0xff] }
 0x108   :  { %2914 = vrcp.f32 %v276_v40  ;;  %v401_v40 = vld [vmem:[%s3866_s4 + $0x90] sm:$0xff] }
 0x109   :  { %2569 = vmatpush3.bf16.msra.mxu1 %v2568_v41  ;;  %v2571_v44 = vpack.c.bf16 %v402_v43, %v401_v40  ;;  %v649_v40 = vld [vmem:[%s3866_s4 + $0x118] sm:$0xff]  ;;  %v650_v43 = vld [vmem:[%s3866_s4 + $0x120] sm:$0xff] }
 0x10a   :  { %2570 = vmatprep.subr.bf16.mxu1 %v2975_v0  ;;  %v2643_v41 = vpack.c.bf16 %v649_v40, %v648_v38  ;;  %v827_v38 = vld [vmem:[%s3866_s4 + $0x198] sm:$0xff]  ;;  %v828_v40 = vld [vmem:[%s3866_s4 + $0x1a0] sm:$0xff] }
 0x10d   :  { %2572 = vmatpush3.bf16.msra.mxu1 %v2571_v44  ;;  %v651_v44 = vld [vmem:[%s3866_s4 + $0x128] sm:$0xff] }
 0x10e   :  { %2573 = vmatprep.subr.bf16.mxu1 %v2975_v0 }
 0x112   :  { %v2915_v48 = vpop.eup %2914 }
 0x113   :  { %v280_v50 = vsel %vm200_vm5, %v2915_v48, %v2913_v47  ;;  %v2574_v47 = vpack.c.bf16 %v404_v46, %v403_v45  ;;  %v405_v48 = vld [vmem:[%s3866_s4 + $0xb0] sm:$0xff]  ;;  %v2646_v45 = vpack.c.bf16 %v651_v44, %v650_v43 }
 0x114   :  { %283 = vrot.lane.b32.xlu1 %v280_v50, %s2979_s22  ;;  %281 = vrot.lane.b32.xlu0 %v280_v50, %s2980_s23  ;;  %v652_v46 = vld [vmem:[%s3866_s4 + $0x130] sm:$0xff] }
 0x115   :  { %2575 = vmatpush3.bf16.msra.mxu1 %v2574_v47  ;;  %v653_v47 = vld [vmem:[%s3866_s4 + $0x138] sm:$0xff]  ;;  %v830_v44 = vld [vmem:[%s3866_s4 + $0x1b0] sm:$0xff] }
 0x116   :  { %2576 = vmatprep.subr.bf16.mxu1 %v2975_v0 }
 0x118   :  { %285 = vrot.lane.b32.xlu0 %v280_v50, %s2981_s26 }
 0x186   :  { %v282_v52 = vpop.permute.xlu0 %281  ;;  %v284_v60 = vpop.permute.xlu1 %283 }
 0x187   :  { %v287_v54 = vmul.f32 0.0, %v282_v52 }
 0x18a   :  { %v286_v53 = vpop.permute.xlu0 %285 }
 0x18b   :  { %v288_v55 = vmul.f32 %v286_v53, %v280_v50  ;;  %v2577_v50 = vpack.c.bf16 %v406_v49, %v405_v48  ;;  %v2649_v48 = vpack.c.bf16 %v653_v47, %v652_v46  ;;  %v151_v47 = vadd.f32 %v3239_v29, %v3139_v33  ;;  %v833_v29 = vld [vmem:[%s3866_s4 + $0x1c8] sm:$0xff] }
 0x18d   :  { %v3176_v56 = vadd.f32 %v288_v55, %v287_v54  ;;  %2578 = vmatpush3.bf16.msra.mxu1 %v2577_v50 }
 0x18e   :  { %2579 = vmatprep.subr.bf16.mxu1 %v2975_v0 }
 0x18f   :  { %2916 = vtanh.f32 %v3176_v56 }
 0x199   :  { %v2917_v59 = vpop.eup %2916 }
 0x19a   :  { %v291_v62 = vmul.f32 %v2917_v59, %v284_v60  ;;  %v407_v59 = vld [vmem:[%s3866_s4 + $0xc0] sm:$0xff]  ;;  %v408_v60 = vld [vmem:[%s3866_s4 + $0xc8] sm:$0xff] }
 0x19c   :  { %2021 = vmatmul.mubr.f32.vlgmr.msra.gmra.mrb[8].mxu0 %v291_v62 }
 0x19d   :  { %2593 = vmatpush3.bf16.msra.mxu0 %v2592_v61  ;;  %2090 = vmatprep.mubr.msk.f32.mxu0 %vm2976_vm1, %v2977_v6  ;;  %v2580_v61 = vpack.c.bf16 %v408_v60, %v407_v59  ;;  %v654_v60 = vld [vmem:[%s3866_s4 + $0x140] sm:$0xff] }
 0x19e   :  { %2594 = vmatprep.subr.bf16.mxu0 %v2975_v0 }
 0x19f   :  { %2581 = vmatpush3.bf16.msra.mxu1 %v2580_v61  ;;  %v655_v61 = vld [vmem:[%s3866_s4 + $0x148] sm:$0xff] }
 0x1a0   :  { %2582 = vmatprep.subr.bf16.mxu1 %v2975_v0 }
 0x1a1   :  { %2596 = vmatpush3.bf16.msra.mxu0 %v2595_v2  ;;  %v412_v2 = vld [vmem:[%s3866_s4 + $0xe8] sm:$0xff] }
 0x1a2   :  { %2597 = vmatprep.subr.bf16.mxu0 %v2975_v0  ;;  %v2586_v3 = vpack.c.bf16 %v412_v2, %v411_v1  ;;  %v658_v1 = vld [vmem:[%s3866_s4 + $0x160] sm:$0xff]  ;;  %v659_v2 = vld [vmem:[%s3866_s4 + $0x168] sm:$0xff] }
 0x1a5   :  { %2599 = vmatpush3.bf16.msra.mxu0 %v2598_v8 }
 0x1a6   :  { %2600 = vmatprep.subr.bf16.mxu0 %v2975_v0 }
 0x1a9   :  { %2602 = vmatpush3.bf16.msra.mxu0 %v2601_v11 }
 0x1aa   :  { %2603 = vmatprep.subr.bf16.mxu0 %v2975_v0 }
 0x1ad   :  { %2605 = vmatpush3.bf16.msra.mxu0 %v2604_v15 }
 0x1ae   :  { %2606 = vmatprep.subr.bf16.mxu0 %v2975_v0 }
 0x1b1   :  { %2608 = vmatpush3.bf16.msra.mxu0 %v2607_v19 }
 0x1b2   :  { %2609 = vmatprep.subr.bf16.mxu0 %v2975_v0 }
 0x1b5   :  { %2611 = vmatpush3.bf16.msra.mxu0 %v2610_v23 }
 0x1b6   :  { %2612 = vmatprep.subr.bf16.mxu0 %v2975_v0 }
 0x1b9   :  { %2614 = vmatpush3.bf16.msra.mxu0 %v2613_v28  ;;  %v647_v28 = vld [vmem:[%s3866_s4 + $0x108] sm:$0xff] }
 0x1ba   :  { %2639 = vmatprep.subr.bf16.mxu0 %v2975_v0 }
 0x1bc   :  { %2091 = vmatmul.mubr.f32.vlgmr.msra.gmra.mrb[10].mxu0 %v291_v62  ;;  %v410_v62 = vld [vmem:[%s3866_s4 + $0xd8] sm:$0xff] }
 0x1bd   :  { %2160 = vmatprep.mubr.msk.f32.mxu0 %vm2976_vm1, %v2977_v6  ;;  %v2583_v63 = vpack.c.bf16 %v410_v62, %v409_v31  ;;  %v2652_v31 = vpack.c.bf16 %v655_v61, %v654_v60  ;;  %v657_v62 = vld [vmem:[%s3866_s4 + $0x158] sm:$0xff] }
 0x1be   :  { %v835_v61 = vld [vmem:[%s3866_s4 + $0x1d8] sm:$0xff] }
 0x1bf   :  { %2584 = vmatpush3.bf16.msra.mxu1 %v2583_v63 }
 0x1c0   :  { %2585 = vmatprep.subr.bf16.mxu1 %v2975_v0 }
 0x1c3   :  { %2587 = vmatpush3.bf16.msra.mxu1 %v2586_v3  ;;  %v2658_v3 = vpack.c.bf16 %v659_v2, %v658_v1 }
 0x1c4   :  { %2588 = vmatprep.subr.bf16.mxu1 %v2975_v0 }
 0x1c7   :  { %2590 = vmatpush3.bf16.msra.mxu1 %v2589_v12  ;;  %v2661_v12 = vpack.c.bf16 %v661_v10, %v660_v9 }
 0x1c8   :  { %2615 = vmatprep.subr.bf16.mxu1 %v2975_v0 }
 0x26f   :  { %v375_v52 = vpop.f32.mrb[8].mxu0 }
 0x270   :  { %v379_v53 = vadd.f32 %v375_v52, %v141_v51  ;;  %v2022_v54 = vpop.f32.mrb[9].mxu0  ;;  %v146_v52 = vadd.f32 %v3139_v33, %v3241_v32  ;;  %v656_v32 = vld [vmem:[%s3866_s4 + $0x150] sm:$0xff] }
 0x271   :  { %v2655_v63 = vpack.c.bf16 %v657_v62, %v656_v32  ;;  %v836_v32 = vld [vmem:[%s3866_s4 + $0x1e0] sm:$0xff]  ;;  %v837_v62 = vld [vmem:[%s3866_s4 + $0x1e8] sm:$0xff] }
 0x272   :  { %v1647_v55 = vmul.f32 -1.442695, %v379_v53 }
 0x274   :  { %2918 = vpow2.f32 %v1647_v55 }
 0x275   :  { %2920 = vtanh.f32 %v379_v53 }
 0x27e   :  { %v2919_v57 = vpop.eup %2918 }
 0x27f   :  { %v383_v58 = vadd.f32 1.0, %v2919_v57  ;;  %v2921_v5 = vpop.eup %2920 }
 0x281   :  { %2922 = vrcp.f32 %v383_v58 }
 0x28b   :  { %v2923_v8 = vpop.eup %2922 }
 0x28c   :  { %v387_v11 = vsel %vm200_vm5, %v2923_v8, %v2921_v5 }
 0x28d   :  { %392 = vrot.lane.b32.xlu0 %v387_v11, %s2981_s26  ;;  %388 = vrot.lane.b32.xlu1 %v387_v11, %s2980_s23 }
 0x28f   :  { %v3312_v13 = vpop.f32.mrb[10].mxu0 }
 0x290   :  { %v2092_v15 = vpop.f32.mrb[11].mxu0 }
 0x291   :  { %390 = vrot.lane.b32.xlu1 %v387_v11, %s2979_s22 }
 0x2ff   :  { %v393_v16 = vpop.permute.xlu0 %392  ;;  %v389_v17 = vpop.permute.xlu1 %388 }
 0x300   :  { %v395_v19 = vmul.f32 %v393_v16, %v387_v11  ;;  %v394_v20 = vmul.f32 %v389_v17, %v3176_v56  ;;  %v646_v56 = vld [vmem:[%s3866_s4 + $0x100] sm:$0xff] }
 0x301   :  { %v2640_v39 = vpack.c.bf16 %v647_v28, %v646_v56  ;;  %v826_v56 = vld [vmem:[%s3866_s4 + $0x190] sm:$0xff] }
 0x302   :  { %v3317_v22 = vadd.f32 %v395_v19, %v394_v20 }
 0x303   :  { %v391_v25 = vpop.permute.xlu1 %390  ;;  %2641 = vmatpush3.bf16.msra.mxu0 %v2640_v39  ;;  %v2691_v39 = vpack.c.bf16 %v827_v38, %v826_v56  ;;  %v1007_v38 = vld [vmem:[%s3866_s4 + $0x228] sm:$0xff] }
 0x304   :  { %2924 = vtanh.f32 %v3317_v22  ;;  %2642 = vmatprep.subr.bf16.mxu0 %v2975_v0 }
 0x307   :  { %2644 = vmatpush3.bf16.msra.mxu0 %v2643_v41  ;;  %v829_v41 = vld [vmem:[%s3866_s4 + $0x1a8] sm:$0xff] }
 0x308   :  { %2645 = vmatprep.subr.bf16.mxu0 %v2975_v0  ;;  %v2694_v43 = vpack.c.bf16 %v829_v41, %v828_v40  ;;  %v1008_v40 = vld [vmem:[%s3866_s4 + $0x230] sm:$0xff]  ;;  %v1009_v41 = vld [vmem:[%s3866_s4 + $0x238] sm:$0xff] }
 0x30b   :  { %2647 = vmatpush3.bf16.msra.mxu0 %v2646_v45  ;;  %v831_v45 = vld [vmem:[%s3866_s4 + $0x1b8] sm:$0xff] }
 0x30c   :  { %2648 = vmatprep.subr.bf16.mxu0 %v2975_v0  ;;  %v2697_v46 = vpack.c.bf16 %v831_v45, %v830_v44  ;;  %v156_v44 = vadd.f32 %v3139_v33, %v3245_v35  ;;  %v1011_v35 = vld [vmem:[%s3866_s4 + $0x248] sm:$0xff] }
 0x30e   :  { %v2925_v23 = vpop.eup %2924 }
 0x30f   :  { %v398_v26 = vmul.f32 %v2925_v23, %v391_v25  ;;  %2650 = vmatpush3.bf16.msra.mxu0 %v2649_v48 }
 0x310   :  { %2651 = vmatprep.subr.bf16.mxu0 %v2975_v0 }
 0x311   :  { %2056 = vmatmul.mubr.f32.vlgmr.msra.gmra.mrb[2].mxu1 %v398_v26 }
 0x312   :  { %2617 = vmatpush3.bf16.msra.mxu1 %v3027_v4  ;;  %2125 = vmatprep.mubr.msk.f32.mxu1 %vm2976_vm1, %v2977_v6 }
 0x313   :  { %2618 = vmatprep.subr.bf16.mxu1 %v2975_v0  ;;  %2653 = vmatpush3.bf16.msra.mxu0 %v2652_v31 }
 0x314   :  { %2654 = vmatprep.subr.bf16.mxu0 %v2975_v0 }
 0x316   :  { %2620 = vmatpush3.bf16.msra.mxu1 %v3035_v7 }
 0x317   :  { %2621 = vmatprep.subr.bf16.mxu1 %v2975_v0  ;;  %2656 = vmatpush3.bf16.msra.mxu0 %v2655_v63  ;;  %v2706_v63 = vpack.c.bf16 %v837_v62, %v836_v32  ;;  %v1016_v62 = vld [vmem:[%s3866_s4 + $0x270] sm:$0xff] }
 0x318   :  { %2657 = vmatprep.subr.bf16.mxu0 %v2975_v0 }
 0x31a   :  { %2623 = vmatpush3.bf16.msra.mxu1 %v3055_v14 }
 0x31b   :  { %2624 = vmatprep.subr.bf16.mxu1 %v2975_v0  ;;  %2659 = vmatpush3.bf16.msra.mxu0 %v2658_v3  ;;  %v838_v3 = vld [vmem:[%s3866_s4 + $0x1f0] sm:$0xff] }
 0x31c   :  { %2660 = vmatprep.subr.bf16.mxu0 %v2975_v0 }
 0x31e   :  { %2626 = vmatpush3.bf16.msra.mxu1 %v3069_v18 }
 0x31f   :  { %2627 = vmatprep.subr.bf16.mxu1 %v2975_v0  ;;  %2662 = vmatpush3.bf16.msra.mxu0 %v2661_v12 }
 0x320   :  { %2687 = vmatprep.subr.bf16.mxu0 %v2975_v0 }
 0x322   :  { %2629 = vmatpush3.bf16.msra.mxu1 %v3082_v21 }
 0x323   :  { %2630 = vmatprep.subr.bf16.mxu1 %v2975_v0 }
 0x326   :  { %2632 = vmatpush3.bf16.msra.mxu1 %v3094_v24 }
 0x327   :  { %2633 = vmatprep.subr.bf16.mxu1 %v2975_v0 }
 0x32a   :  { %2635 = vmatpush3.bf16.msra.mxu1 %v3106_v27 }
 0x32b   :  { %2636 = vmatprep.subr.bf16.mxu1 %v2975_v0 }
 0x32e   :  { %2638 = vmatpush3.bf16.msra.mxu1 %v3118_v30 }
 0x32f   :  { %2663 = vmatprep.subr.bf16.mxu1 %v2975_v0 }
 0x331   :  { %2126 = vmatmul.mubr.f32.vlgmr.msra.gmra.mrb[4].mxu1 %v398_v26  ;;  %v825_v26 = vld [vmem:[%s3866_s4 + $0x188] sm:$0xff] }
 0x332   :  { %2665 = vmatpush3.bf16.msra.mxu1 %v3027_v4  ;;  %2195 = vmatprep.mubr.msk.f32.mxu1 %vm2976_vm1, %v2977_v6 }
 0x333   :  { %2666 = vmatprep.subr.bf16.mxu1 %v2975_v0 }
 0x336   :  { %2668 = vmatpush3.bf16.msra.mxu1 %v3035_v7 }
 0x337   :  { %2669 = vmatprep.subr.bf16.mxu1 %v2975_v0 }
 0x33a   :  { %2671 = vmatpush3.bf16.msra.mxu1 %v3055_v14 }
 0x33b   :  { %2672 = vmatprep.subr.bf16.mxu1 %v2975_v0 }
 0x33e   :  { %2674 = vmatpush3.bf16.msra.mxu1 %v3069_v18 }
 0x33f   :  { %2675 = vmatprep.subr.bf16.mxu1 %v2975_v0 }
 0x342   :  { %2677 = vmatpush3.bf16.msra.mxu1 %v3082_v21 }
 0x343   :  { %2678 = vmatprep.subr.bf16.mxu1 %v2975_v0 }
 0x346   :  { %2680 = vmatpush3.bf16.msra.mxu1 %v3094_v24 }
 0x347   :  { %2681 = vmatprep.subr.bf16.mxu1 %v2975_v0 }
 0x34a   :  { %2683 = vmatpush3.bf16.msra.mxu1 %v3106_v27 }
 0x34b   :  { %2684 = vmatprep.subr.bf16.mxu1 %v2975_v0 }
 0x34e   :  { %2686 = vmatpush3.bf16.msra.mxu1 %v3118_v30 }
 0x34f   :  { %2711 = vmatprep.subr.bf16.mxu1 %v2975_v0 }
 0x3e4   :  { %v481_v49 = vpop.f32.mrb[2].mxu1 }
 0x3e5   :  { %v3385_v50 = vadd.f32 %v3312_v13, %v481_v49  ;;  %v2057_v51 = vpop.f32.mrb[3].mxu1 }
 0x404   :  { %v622_v53 = vpop.f32.mrb[4].mxu1 }
 0x405   :  { %v626_v54 = vadd.f32 %v622_v53, %v146_v52  ;;  %v2127_v55 = vpop.f32.mrb[5].mxu1 }
 0x407   :  { %v1648_v57 = vmul.f32 -1.442695, %v626_v54 }
 0x409   :  { %2926 = vpow2.f32 %v1648_v57 }
 0x40a   :  { %2928 = vtanh.f32 %v626_v54 }
 0x413   :  { %v2927_v58 = vpop.eup %2926 }
 0x414   :  { %v630_v59 = vadd.f32 1.0, %v2927_v58  ;;  %v2929_v5 = vpop.eup %2928 }
 0x416   :  { %2930 = vrcp.f32 %v630_v59  ;;  %v832_v59 = vld [vmem:[%s3866_s4 + $0x1c0] sm:$0xff] }
 0x417   :  { %v2700_v60 = vpack.c.bf16 %v833_v29, %v832_v59  ;;  %v1013_v59 = vld [vmem:[%s3866_s4 + $0x258] sm:$0xff] }
 0x420   :  { %v2931_v8 = vpop.eup %2930 }
 0x421   :  { %v634_v11 = vsel %vm200_vm5, %v2931_v8, %v2929_v5  ;;  %v839_v5 = vld [vmem:[%s3866_s4 + $0x1f8] sm:$0xff] }
 0x422   :  { %639 = vrot.lane.b32.xlu1 %v634_v11, %s2981_s26  ;;  %635 = vrot.lane.b32.xlu0 %v634_v11, %s2980_s23  ;;  %v2709_v9 = vpack.c.bf16 %v839_v5, %v838_v3 }
 0x426   :  { %637 = vrot.lane.b32.xlu0 %v634_v11, %s2979_s22 }
 0x494   :  { %v640_v13 = vpop.permute.xlu1 %639  ;;  %v636_v15 = vpop.permute.xlu0 %635 }
 0x495   :  { %v642_v16 = vmul.f32 %v640_v13, %v634_v11  ;;  %v641_v17 = vmul.f32 %v636_v15, %v3317_v22  ;;  %v824_v22 = vld [vmem:[%s3866_s4 + $0x180] sm:$0xff] }
 0x496   :  { %v2688_v28 = vpack.c.bf16 %v825_v26, %v824_v22  ;;  %v1005_v26 = vld [vmem:[%s3866_s4 + $0x218] sm:$0xff] }
 0x497   :  { %v3423_v19 = vadd.f32 %v642_v16, %v641_v17 }
 0x498   :  { %v638_v23 = vpop.permute.xlu0 %637 }
 0x499   :  { %2932 = vtanh.f32 %v3423_v19 }
 0x4a3   :  { %v2933_v20 = vpop.eup %2932 }
 0x4a4   :  { %v645_v25 = vmul.f32 %v2933_v20, %v638_v23  ;;  %v1003_v23 = vld [vmem:[%s3866_s4 + $0x208] sm:$0xff] }
 0x4a6   :  { %2161 = vmatmul.mubr.f32.vlgmr.msra.gmra.mrb[12].mxu0 %v645_v25  ;;  %2196 = vmatmul.mubr.f32.vlgmr.msra.gmra.mrb[6].mxu1 %v645_v25  ;;  %v1004_v25 = vld [vmem:[%s3866_s4 + $0x210] sm:$0xff] }
 0x4a7   :  { %2713 = vmatpush3.bf16.msra.mxu1 %v3027_v4  ;;  %2230 = vmatprep.mubr.msk.f32.mxu0 %vm2976_vm1, %v2977_v6  ;;  %v2739_v56 = vpack.c.bf16 %v1005_v26, %v1004_v25  ;;  %v1184_v25 = vld [vmem:[%s3866_s4 + $0x2a0] sm:$0xff] }
 0x4a8   :  { %2714 = vmatprep.subr.bf16.mxu1 %v2975_v0  ;;  %2265 = vmatprep.mubr.msk.f32.mxu1 %vm2976_vm1, %v2977_v6 }
 0x4a9   :  { %2689 = vmatpush3.bf16.msra.mxu0 %v2688_v28  ;;  %v1006_v28 = vld [vmem:[%s3866_s4 + $0x220] sm:$0xff] }
 0x4aa   :  { %2690 = vmatprep.subr.bf16.mxu0 %v2975_v0 }
 0x4ab   :  { %2716 = vmatpush3.bf16.msra.mxu1 %v3035_v7 }
 0x4ac   :  { %2717 = vmatprep.subr.bf16.mxu1 %v2975_v0 }
 0x4ad   :  { %2692 = vmatpush3.bf16.msra.mxu0 %v2691_v39  ;;  %v2742_v39 = vpack.c.bf16 %v1007_v38, %v1006_v28  ;;  %v1187_v28 = vld [vmem:[%s3866_s4 + $0x2b8] sm:$0xff] }
 0x4ae   :  { %2693 = vmatprep.subr.bf16.mxu0 %v2975_v0 }
 0x4af   :  { %2719 = vmatpush3.bf16.msra.mxu1 %v3055_v14 }
 0x4b0   :  { %2720 = vmatprep.subr.bf16.mxu1 %v2975_v0 }
 0x4b1   :  { %2695 = vmatpush3.bf16.msra.mxu0 %v2694_v43  ;;  %v2745_v43 = vpack.c.bf16 %v1009_v41, %v1008_v40 }
 0x4b2   :  { %2696 = vmatprep.subr.bf16.mxu0 %v2975_v0 }
 0x4b3   :  { %2722 = vmatpush3.bf16.msra.mxu1 %v3069_v18 }
 0x4b4   :  { %2723 = vmatprep.subr.bf16.mxu1 %v2975_v0 }
 0x4b5   :  { %2698 = vmatpush3.bf16.msra.mxu0 %v2697_v46 }
 0x4b6   :  { %2699 = vmatprep.subr.bf16.mxu0 %v2975_v0 }
 0x4b7   :  { %2725 = vmatpush3.bf16.msra.mxu1 %v3082_v21 }
 0x4b8   :  { %2726 = vmatprep.subr.bf16.mxu1 %v2975_v0 }
 0x4b9   :  { %2701 = vmatpush3.bf16.msra.mxu0 %v2700_v60  ;;  %v1014_v60 = vld [vmem:[%s3866_s4 + $0x260] sm:$0xff] }
 0x4ba   :  { %2702 = vmatprep.subr.bf16.mxu0 %v2975_v0 }
 0x4bb   :  { %2728 = vmatpush3.bf16.msra.mxu1 %v3094_v24 }
 0x4bc   :  { %2729 = vmatprep.subr.bf16.mxu1 %v2975_v0 }
 0x4bf   :  { %2731 = vmatpush3.bf16.msra.mxu1 %v3106_v27 }
 0x4c0   :  { %2732 = vmatprep.subr.bf16.mxu1 %v2975_v0 }
 0x4c3   :  { %2734 = vmatpush3.bf16.msra.mxu1 %v3118_v30 }
 0x4c4   :  { %2759 = vmatprep.subr.bf16.mxu1 %v2975_v0 }
 0x579   :  { %v728_v48 = vpop.f32.mrb[12].mxu0  ;;  %v800_v49 = vpop.f32.mrb[6].mxu1 }
 0x57a   :  { %v3477_v51 = vadd.f32 %v728_v48, %v3385_v50  ;;  %v804_v52 = vadd.f32 %v800_v49, %v151_v47  ;;  %v2162_v53 = vpop.f32.mrb[13].mxu0  ;;  %v2197_v54 = vpop.f32.mrb[7].mxu1  ;;  %v834_v50 = vld [vmem:[%s3866_s4 + $0x1d0] sm:$0xff] }
 0x57b   :  { %v2703_v31 = vpack.c.bf16 %v835_v61, %v834_v50  ;;  %v1015_v50 = vld [vmem:[%s3866_s4 + $0x268] sm:$0xff] }
 0x57c   :  { %v1649_v55 = vmul.f32 -1.442695, %v804_v52  ;;  %v2754_v61 = vpack.c.bf16 %v1015_v50, %v1014_v60  ;;  %v1195_v60 = vld [vmem:[%s3866_s4 + $0x2f8] sm:$0xff] }
 0x57d   :  { %2704 = vmatpush3.bf16.msra.mxu0 %v2703_v31 }
 0x57e   :  { %2934 = vpow2.f32 %v1649_v55  ;;  %2705 = vmatprep.subr.bf16.mxu0 %v2975_v0 }
 0x57f   :  { %2936 = vtanh.f32 %v804_v52 }
 0x581   :  { %2707 = vmatpush3.bf16.msra.mxu0 %v2706_v63  ;;  %v1017_v63 = vld [vmem:[%s3866_s4 + $0x278] sm:$0xff] }
 0x582   :  { %2708 = vmatprep.subr.bf16.mxu0 %v2975_v0 }
 0x585   :  { %2710 = vmatpush3.bf16.msra.mxu0 %v2709_v9 }
 0x586   :  { %2735 = vmatprep.subr.bf16.mxu0 %v2975_v0 }
 0x588   :  { %v2935_v57 = vpop.eup %2934 }
 0x589   :  { %v808_v58 = vadd.f32 1.0, %v2935_v57  ;;  %v2937_v1 = vpop.eup %2936  ;;  %v1010_v57 = vld [vmem:[%s3866_s4 + $0x240] sm:$0xff] }
 0x58b   :  { %2938 = vrcp.f32 %v808_v58  ;;  %v2748_v58 = vpack.c.bf16 %v1011_v35, %v1010_v57  ;;  %v1192_v57 = vld [vmem:[%s3866_s4 + $0x2e0] sm:$0xff]  ;;  %v1193_v35 = vld [vmem:[%s3866_s4 + $0x2e8] sm:$0xff] }
 0x595   :  { %v2939_v2 = vpop.eup %2938 }
 0x596   :  { %v812_v8 = vsel %vm200_vm5, %v2939_v2, %v2937_v1  ;;  %v2757_v2 = vpack.c.bf16 %v1017_v63, %v1016_v62 }
 0x597   :  { %817 = vrot.lane.b32.xlu0 %v812_v8, %s2981_s26  ;;  %813 = vrot.lane.b32.xlu1 %v812_v8, %s2980_s23 }
 0x59b   :  { %815 = vrot.lane.b32.xlu1 %v812_v8, %s2979_s22 }
 0x609   :  { %v818_v10 = vpop.permute.xlu0 %817  ;;  %v814_v11 = vpop.permute.xlu1 %813 }
 0x60a   :  { %v820_v12 = vmul.f32 %v818_v10, %v812_v8  ;;  %v819_v13 = vmul.f32 %v814_v11, %v3423_v19  ;;  %v1002_v19 = vld [vmem:[%s3866_s4 + $0x200] sm:$0xff] }
 0x60b   :  { %v2736_v22 = vpack.c.bf16 %v1003_v23, %v1002_v19  ;;  %v1183_v19 = vld [vmem:[%s3866_s4 + $0x298] sm:$0xff] }
 0x60c   :  { %v3513_v15 = vadd.f32 %v820_v12, %v819_v13 }
 0x60d   :  { %v816_v17 = vpop.permute.xlu1 %815 }
 0x60e   :  { %2940 = vtanh.f32 %v3513_v15 }
 0x618   :  { %v2941_v16 = vpop.eup %2940 }
 0x619   :  { %v823_v20 = vmul.f32 %v2941_v16, %v816_v17  ;;  %v1181_v16 = vld [vmem:[%s3866_s4 + $0x288] sm:$0xff]  ;;  %v1182_v17 = vld [vmem:[%s3866_s4 + $0x290] sm:$0xff] }
 0x61a   :  { %v2787_v23 = vpack.c.bf16 %v1183_v19, %v1182_v17 }
 0x61b   :  { %2231 = vmatmul.mubr.f32.vlgmr.msra.gmra.mrb[14].mxu0 %v823_v20  ;;  %2266 = vmatmul.mubr.f32.vlgmr.msra.gmra.mrb[8].mxu1 %v823_v20 }
 0x61c   :  { %2761 = vmatpush3.bf16.msra.mxu1 %v3027_v4  ;;  %2300 = vmatprep.mubr.msk.f32.mxu0 %vm2976_vm1, %v2977_v6 }
 0x61d   :  { %2762 = vmatprep.subr.bf16.mxu1 %v2975_v0  ;;  %2335 = vmatprep.mubr.msk.f32.mxu1 %vm2976_vm1, %v2977_v6 }
 0x61e   :  { %2737 = vmatpush3.bf16.msra.mxu0 %v2736_v22  ;;  %v1185_v22 = vld [vmem:[%s3866_s4 + $0x2a8] sm:$0xff] }
 0x61f   :  { %2738 = vmatprep.subr.bf16.mxu0 %v2975_v0  ;;  %v2790_v26 = vpack.c.bf16 %v1185_v22, %v1184_v25 }
 0x620   :  { %2764 = vmatpush3.bf16.msra.mxu1 %v3035_v7 }
 0x621   :  { %2765 = vmatprep.subr.bf16.mxu1 %v2975_v0 }
 0x622   :  { %2740 = vmatpush3.bf16.msra.mxu0 %v2739_v56  ;;  %v1186_v56 = vld [vmem:[%s3866_s4 + $0x2b0] sm:$0xff] }
 0x623   :  { %2741 = vmatprep.subr.bf16.mxu0 %v2975_v0  ;;  %v2793_v38 = vpack.c.bf16 %v1187_v28, %v1186_v56  ;;  %v1366_v56 = vld [vmem:[%s3866_s4 + $0x340] sm:$0xff] }
 0x624   :  { %2767 = vmatpush3.bf16.msra.mxu1 %v3055_v14 }
 0x625   :  { %2768 = vmatprep.subr.bf16.mxu1 %v2975_v0 }
 0x626   :  { %2743 = vmatpush3.bf16.msra.mxu0 %v2742_v39  ;;  %v161_v39 = vadd.f32 %v3243_v34, %v3139_v33  ;;  %v1189_v33 = vld [vmem:[%s3866_s4 + $0x2c8] sm:$0xff] }
 0x627   :  { %2744 = vmatprep.subr.bf16.mxu0 %v2975_v0 }
 0x628   :  { %2770 = vmatpush3.bf16.msra.mxu1 %v3069_v18 }
 0x629   :  { %2771 = vmatprep.subr.bf16.mxu1 %v2975_v0 }
 0x62a   :  { %2746 = vmatpush3.bf16.msra.mxu0 %v2745_v43 }
 0x62b   :  { %2747 = vmatprep.subr.bf16.mxu0 %v2975_v0 }
 0x62c   :  { %2773 = vmatpush3.bf16.msra.mxu1 %v3082_v21 }
 0x62d   :  { %2774 = vmatprep.subr.bf16.mxu1 %v2975_v0 }
 0x62e   :  { %2749 = vmatpush3.bf16.msra.mxu0 %v2748_v58  ;;  %v2802_v58 = vpack.c.bf16 %v1193_v35, %v1192_v57 }
 0x62f   :  { %2750 = vmatprep.subr.bf16.mxu0 %v2975_v0 }
 0x630   :  { %2776 = vmatpush3.bf16.msra.mxu1 %v3094_v24 }
 0x631   :  { %2777 = vmatprep.subr.bf16.mxu1 %v2975_v0 }
 0x634   :  { %2779 = vmatpush3.bf16.msra.mxu1 %v3106_v27 }
 0x635   :  { %2780 = vmatprep.subr.bf16.mxu1 %v2975_v0 }
 0x638   :  { %2782 = vmatpush3.bf16.msra.mxu1 %v3118_v30 }
 0x639   :  { %2807 = vmatprep.subr.bf16.mxu1 %v2975_v0 }
 0x6ee   :  { %v906_v45 = vpop.f32.mrb[14].mxu0  ;;  %v978_v46 = vpop.f32.mrb[8].mxu1 }
 0x6ef   :  { %v3567_v47 = vadd.f32 %v906_v45, %v3477_v51  ;;  %v982_v48 = vadd.f32 %v978_v46, %v156_v44  ;;  %v2232_v49 = vpop.f32.mrb[15].mxu0  ;;  %v2267_v52 = vpop.f32.mrb[9].mxu1  ;;  %v1012_v51 = vld [vmem:[%s3866_s4 + $0x250] sm:$0xff] }
 0x6f0   :  { %v2751_v29 = vpack.c.bf16 %v1013_v59, %v1012_v51 }
 0x6f1   :  { %v1650_v53 = vmul.f32 -1.442695, %v982_v48 }
 0x6f2   :  { %2752 = vmatpush3.bf16.msra.mxu0 %v2751_v29  ;;  %v1194_v29 = vld [vmem:[%s3866_s4 + $0x2f0] sm:$0xff] }
 0x6f3   :  { %2942 = vpow2.f32 %v1650_v53  ;;  %2753 = vmatprep.subr.bf16.mxu0 %v2975_v0  ;;  %v1188_v53 = vld [vmem:[%s3866_s4 + $0x2c0] sm:$0xff] }
 0x6f4   :  { %2944 = vtanh.f32 %v982_v48  ;;  %v2796_v34 = vpack.c.bf16 %v1189_v33, %v1188_v53 }
 0x6f6   :  { %2755 = vmatpush3.bf16.msra.mxu0 %v2754_v61  ;;  %v2805_v61 = vpack.c.bf16 %v1195_v60, %v1194_v29  ;;  %v1538_v29 = vld [vmem:[%s3866_s4 + $0x390] sm:$0xff] }
 0x6f7   :  { %2756 = vmatprep.subr.bf16.mxu0 %v2975_v0 }
 0x6fa   :  { %2758 = vmatpush3.bf16.msra.mxu0 %v2757_v2 }
 0x6fb   :  { %2783 = vmatprep.subr.bf16.mxu0 %v2975_v0 }
 0x6fd   :  { %v2943_v54 = vpop.eup %2942 }
 0x6fe   :  { %v986_v55 = vadd.f32 1.0, %v2943_v54  ;;  %v2945_v31 = vpop.eup %2944  ;;  %v1191_v54 = vld [vmem:[%s3866_s4 + $0x2d8] sm:$0xff] }
 0x700   :  { %2946 = vrcp.f32 %v986_v55 }
 0x70a   :  { %v2947_v32 = vpop.eup %2946 }
 0x70b   :  { %v990_v1 = vsel %vm200_vm5, %v2947_v32, %v2945_v31 }
 0x70c   :  { %995 = vrot.lane.b32.xlu1 %v990_v1, %s2981_s26  ;;  %991 = vrot.lane.b32.xlu0 %v990_v1, %s2980_s23 }
 0x710   :  { %993 = vrot.lane.b32.xlu0 %v990_v1, %s2979_s22 }
 0x77e   :  { %v996_v3 = vpop.permute.xlu1 %995  ;;  %v992_v5 = vpop.permute.xlu0 %991 }
 0x77f   :  { %v998_v8 = vmul.f32 %v996_v3, %v990_v1  ;;  %v997_v9 = vmul.f32 %v992_v5, %v3513_v15  ;;  %v1180_v15 = vld [vmem:[%s3866_s4 + $0x280] sm:$0xff] }
 0x780   :  { %v2784_v20 = vpack.c.bf16 %v1181_v16, %v1180_v15 }
 0x781   :  { %v3603_v10 = vadd.f32 %v998_v8, %v997_v9  ;;  %v1364_v9 = vld [vmem:[%s3866_s4 + $0x330] sm:$0xff] }
 0x782   :  { %v994_v12 = vpop.permute.xlu0 %993 }
 0x783   :  { %2948 = vtanh.f32 %v3603_v10 }
 0x78d   :  { %v2949_v11 = vpop.eup %2948 }
 0x78e   :  { %v1001_v13 = vmul.f32 %v2949_v11, %v994_v12  ;;  %v3746_v12 = vld [vmem:[%s3865_s3] ss:$0 sm:$0xff] }
 0x790   :  { %2301 = vmatmul.mubr.f32.vlgmr.msra.gmra.mrb[16].mxu0 %v1001_v13  ;;  %2336 = vmatmul.mubr.f32.vlgmr.msra.gmra.mrb[10].mxu1 %v1001_v13  ;;  %v166_v13 = vadd.f32 %v3746_v12, %v3249_v37  ;;  %v1367_v37 = vld [vmem:[%s3866_s4 + $0x348] sm:$0xff] }
 0x791   :  { %2809 = vmatpush3.bf16.msra.mxu1 %v3027_v4  ;;  %2370 = vmatprep.mubr.msk.f32.mxu0 %vm2976_vm1, %v2977_v6  ;;  %v2844_v28 = vpack.c.bf16 %v1367_v37, %v1366_v56 }
 0x792   :  { %2810 = vmatprep.subr.bf16.mxu1 %v2975_v0  ;;  %2405 = vmatprep.mubr.msk.f32.mxu1 %vm2976_vm1, %v2977_v6 }
 0x793   :  { %2785 = vmatpush3.bf16.msra.mxu0 %v2784_v20 }
 0x794   :  { %2786 = vmatprep.subr.bf16.mxu0 %v2975_v0 }
 0x795   :  { %2812 = vmatpush3.bf16.msra.mxu1 %v3035_v7 }
 0x796   :  { %2813 = vmatprep.subr.bf16.mxu1 %v2975_v0 }
 0x797   :  { %2788 = vmatpush3.bf16.msra.mxu0 %v2787_v23 }
 0x798   :  { %2789 = vmatprep.subr.bf16.mxu0 %v2975_v0 }
 0x799   :  { %2815 = vmatpush3.bf16.msra.mxu1 %v3055_v14 }
 0x79a   :  { %2816 = vmatprep.subr.bf16.mxu1 %v2975_v0 }
 0x79b   :  { %2791 = vmatpush3.bf16.msra.mxu0 %v2790_v26 }
 0x79c   :  { %2792 = vmatprep.subr.bf16.mxu0 %v2975_v0 }
 0x79d   :  { %2818 = vmatpush3.bf16.msra.mxu1 %v3069_v18 }
 0x79e   :  { %2819 = vmatprep.subr.bf16.mxu1 %v2975_v0 }
 0x79f   :  { %2794 = vmatpush3.bf16.msra.mxu0 %v2793_v38  ;;  %v1368_v38 = vld [vmem:[%s3866_s4 + $0x350] sm:$0xff] }
 0x7a0   :  { %2795 = vmatprep.subr.bf16.mxu0 %v2975_v0 }
 0x7a1   :  { %2821 = vmatpush3.bf16.msra.mxu1 %v3082_v21 }
 0x7a2   :  { %2822 = vmatprep.subr.bf16.mxu1 %v2975_v0 }
 0x7a3   :  { %2797 = vmatpush3.bf16.msra.mxu0 %v2796_v34 }
 0x7a4   :  { %2798 = vmatprep.subr.bf16.mxu0 %v2975_v0 }
 0x7a5   :  { %2824 = vmatpush3.bf16.msra.mxu1 %v3094_v24 }
 0x7a6   :  { %2825 = vmatprep.subr.bf16.mxu1 %v2975_v0 }
 0x7a9   :  { %2827 = vmatpush3.bf16.msra.mxu1 %v3106_v27 }
 0x7aa   :  { %2828 = vmatprep.subr.bf16.mxu1 %v2975_v0 }
 0x7ad   :  { %2830 = vmatpush3.bf16.msra.mxu1 %v3118_v30 }
 0x7ae   :  { %2855 = vmatprep.subr.bf16.mxu1 %v2975_v0 }
 0x863   :  { %v1084_v40 = vpop.f32.mrb[16].mxu0  ;;  %v1156_v41 = vpop.f32.mrb[10].mxu1 }
 0x864   :  { %v3657_v43 = vadd.f32 %v1084_v40, %v3567_v47  ;;  %v1160_v44 = vadd.f32 %v1156_v41, %v161_v39  ;;  %v2302_v45 = vpop.f32.mrb[17].mxu0  ;;  %v2337_v46 = vpop.f32.mrb[11].mxu1  ;;  %v1190_v47 = vld [vmem:[%s3866_s4 + $0x2d0] sm:$0xff]  ;;  %v1369_v39 = vld [vmem:[%s3866_s4 + $0x358] sm:$0xff]  ;;  %v1370_v41 = vld [vmem:[%s3866_s4 + $0x360] sm:$0xff] }
 0x865   :  { %v2799_v55 = vpack.c.bf16 %v1191_v54, %v1190_v47  ;;  %v2847_v40 = vpack.c.bf16 %v1369_v39, %v1368_v38 }
 0x866   :  { %v1651_v48 = vmul.f32 -1.442695, %v1160_v44 }
 0x867   :  { %2800 = vmatpush3.bf16.msra.mxu0 %v2799_v55 }
 0x868   :  { %2950 = vpow2.f32 %v1651_v48  ;;  %2801 = vmatprep.subr.bf16.mxu0 %v2975_v0  ;;  %v1372_v48 = vld [vmem:[%s3866_s4 + $0x370] sm:$0xff] }
 0x869   :  { %2952 = vtanh.f32 %v1160_v44 }
 0x86b   :  { %2803 = vmatpush3.bf16.msra.mxu0 %v2802_v58 }
 0x86c   :  { %2804 = vmatprep.subr.bf16.mxu0 %v2975_v0 }
 0x86f   :  { %2806 = vmatpush3.bf16.msra.mxu0 %v2805_v61 }
 0x870   :  { %2831 = vmatprep.subr.bf16.mxu0 %v2975_v0 }
 0x872   :  { %v2951_v49 = vpop.eup %2950 }
 0x873   :  { %v1164_v52 = vadd.f32 1.0, %v2951_v49  ;;  %v2953_v51 = vpop.eup %2952  ;;  %v1373_v49 = vld [vmem:[%s3866_s4 + $0x378] sm:$0xff] }
 0x874   :  { %v2853_v53 = vpack.c.bf16 %v1373_v49, %v1372_v48 }
 0x875   :  { %2954 = vrcp.f32 %v1164_v52 }
 0x87f   :  { %v2955_v59 = vpop.eup %2954 }
 0x880   :  { %v1168_v50 = vsel %vm200_vm5, %v2955_v59, %v2953_v51  ;;  %v1536_v51 = vld [vmem:[%s3866_s4 + $0x380] sm:$0xff]  ;;  %v1537_v59 = vld [vmem:[%s3866_s4 + $0x388] sm:$0xff] }
 0x881   :  { %1173 = vrot.lane.b32.xlu0 %v1168_v50, %s2981_s26  ;;  %1169 = vrot.lane.b32.xlu1 %v1168_v50, %s2980_s23  ;;  %v2880_v60 = vpack.c.bf16 %v1537_v59, %v1536_v51 }
 0x885   :  { %1171 = vrot.lane.b32.xlu1 %v1168_v50, %s2979_s22 }
 0x8f3   :  { %v1174_v31 = vpop.permute.xlu0 %1173  ;;  %v1170_v32 = vpop.permute.xlu1 %1169 }
 0x8f4   :  { %v1176_v62 = vmul.f32 %v1174_v31, %v1168_v50  ;;  %v1175_v63 = vmul.f32 %v1170_v32, %v3603_v10  ;;  %v1365_v10 = vld [vmem:[%s3866_s4 + $0x338] sm:$0xff]  ;;  %v1541_v31 = vld [vmem:[%s3866_s4 + $0x3a8] sm:$0xff] }
 0x8f5   :  { %v2841_v11 = vpack.c.bf16 %v1365_v10, %v1364_v9  ;;  %v1539_v50 = vld [vmem:[%s3866_s4 + $0x398] sm:$0xff]  ;;  %v1546_v9 = vld [vmem:[%s3866_s4 + $0x3d0] sm:$0xff] }
 0x8f6   :  { %v3693_v1 = vadd.f32 %v1176_v62, %v1175_v63  ;;  %v2883_v61 = vpack.c.bf16 %v1539_v50, %v1538_v29  ;;  %v1542_v62 = vld [vmem:[%s3866_s4 + $0x3b0] sm:$0xff]  ;;  %v1543_v63 = vld [vmem:[%s3866_s4 + $0x3b8] sm:$0xff] }
 0x8f7   :  { %v1172_v3 = vpop.permute.xlu1 %1171  ;;  %v1547_v10 = vld [vmem:[%s3866_s4 + $0x3d8] sm:$0xff] }
 0x8f8   :  { %2956 = vtanh.f32 %v3693_v1 }
 0x902   :  { %v2957_v2 = vpop.eup %2956 }
 0x903   :  { %v1179_v5 = vmul.f32 %v2957_v2, %v1172_v3  ;;  %v171_v2 = vadd.f32 %v3746_v12, %v3247_v36  ;;  %v1548_v12 = vld [vmem:[%s3866_s4 + $0x3e0] sm:$0xff] }
 0x905   :  { %2371 = vmatmul.mubr.f32.vlgmr.msra.gmra.mrb[18].mxu0 %v1179_v5  ;;  %2406 = vmatmul.mubr.f32.vlgmr.msra.gmra.mrb[12].mxu1 %v1179_v5 }
 0x906   :  { %2857 = vmatpush3.bf16.msra.mxu1 %v3027_v4  ;;  %2440 = vmatprep.mubr.msk.f32.mxu0 %vm2976_vm1, %v2977_v6  ;;  %v1358_v4 = vld [vmem:[%s3866_s4 + $0x300] sm:$0xff] }
 0x907   :  { %2858 = vmatprep.subr.bf16.mxu1 %v2975_v0  ;;  %2475 = vmatprep.mubr.msk.f32.mxu1 %vm2976_vm1, %v2977_v6 }
 0x90a   :  { %2860 = vmatpush3.bf16.msra.mxu1 %v3035_v7  ;;  %v1359_v7 = vld [vmem:[%s3866_s4 + $0x308] sm:$0xff] }
 0x90b   :  { %2861 = vmatprep.subr.bf16.mxu1 %v2975_v0 }
 0x90e   :  { %2863 = vmatpush3.bf16.msra.mxu1 %v3055_v14  ;;  %v1360_v14 = vld [vmem:[%s3866_s4 + $0x310] sm:$0xff] }
 0x90f   :  { %2864 = vmatprep.subr.bf16.mxu1 %v2975_v0 }
 0x912   :  { %2866 = vmatpush3.bf16.msra.mxu1 %v3069_v18  ;;  %v2832_v18 = vpack.c.bf16 %v1359_v7, %v1358_v4 }
 0x913   :  { %2867 = vmatprep.subr.bf16.mxu1 %v2975_v0 }
 0x914   :  { %2833 = vmatpush3.bf16.msra.mxu0 %v2832_v18 }
 0x915   :  { %2834 = vmatprep.subr.bf16.mxu0 %v2975_v0 }
 0x916   :  { %2869 = vmatpush3.bf16.msra.mxu1 %v3082_v21  ;;  %v1361_v21 = vld [vmem:[%s3866_s4 + $0x318] sm:$0xff] }
 0x917   :  { %2870 = vmatprep.subr.bf16.mxu1 %v2975_v0 }
 0x91a   :  { %2872 = vmatpush3.bf16.msra.mxu1 %v3094_v24  ;;  %v2835_v24 = vpack.c.bf16 %v1361_v21, %v1360_v14 }
 0x91b   :  { %2873 = vmatprep.subr.bf16.mxu1 %v2975_v0 }
 0x91c   :  { %2836 = vmatpush3.bf16.msra.mxu0 %v2835_v24 }
 0x91d   :  { %2837 = vmatprep.subr.bf16.mxu0 %v2975_v0 }
 0x91e   :  { %2875 = vmatpush3.bf16.msra.mxu1 %v3106_v27  ;;  %v1362_v27 = vld [vmem:[%s3866_s4 + $0x320] sm:$0xff] }
 0x91f   :  { %2876 = vmatprep.subr.bf16.mxu1 %v2975_v0 }
 0x922   :  { %2878 = vmatpush3.bf16.msra.mxu1 %v3118_v30  ;;  %v1363_v30 = vld [vmem:[%s3866_s4 + $0x328] sm:$0xff] }
 0x923   :  { %v2838_v8 = vpack.c.bf16 %v1363_v30, %v1362_v27  ;;  %v1544_v30 = vld [vmem:[%s3866_s4 + $0x3c0] sm:$0xff] }
 0x925   :  { %2839 = vmatpush3.bf16.msra.mxu0 %v2838_v8  ;;  %v1545_v8 = vld [vmem:[%s3866_s4 + $0x3c8] sm:$0xff] }
 0x926   :  { %2840 = vmatprep.subr.bf16.mxu0 %v2975_v0  ;;  %v2892_v36 = vpack.c.bf16 %v1545_v8, %v1544_v30 }
 0x929   :  { %2842 = vmatpush3.bf16.msra.mxu0 %v2841_v11  ;;  %v2895_v11 = vpack.c.bf16 %v1547_v10, %v1546_v9 }
 0x92a   :  { %2843 = vmatprep.subr.bf16.mxu0 %v2975_v0 }
 0x92d   :  { %2845 = vmatpush3.bf16.msra.mxu0 %v2844_v28 }
 0x92e   :  { %2846 = vmatprep.subr.bf16.mxu0 %v2975_v0 }
 0x931   :  { %2848 = vmatpush3.bf16.msra.mxu0 %v2847_v40  ;;  %v1654_v40 = vld [vmem:[%s3867_s5] ss:$0 sm:$0xff] }
 0x932   :  { %2849 = vmatprep.subr.bf16.mxu0 %v2975_v0 }
 0x9d8   :  { %v1262_v15 = vpop.f32.mrb[18].mxu0  ;;  %v1334_v16 = vpop.f32.mrb[12].mxu1 }
 0x9d9   :  { %v3751_v17 = vadd.f32 %v1262_v15, %v3657_v43  ;;  %v1338_v20 = vadd.f32 %v1334_v16, %v166_v13  ;;  %v2372_v19 = vpop.f32.mrb[19].mxu0  ;;  %v2407_v23 = vpop.f32.mrb[13].mxu1  ;;  %v1371_v43 = vld [vmem:[%s3866_s4 + $0x368] sm:$0xff] }
 0x9da   :  { %v2850_v44 = vpack.c.bf16 %v1371_v43, %v1370_v41  ;;  %v1549_v13 = vld [vmem:[%s3866_s4 + $0x3e8] sm:$0xff]  ;;  %v1551_v19 = vld [vmem:[%s3866_s4 + $0x3f8] sm:$0xff] }
 0x9db   :  { %v1652_v25 = vmul.f32 -1.442695, %v1338_v20  ;;  %v2898_v15 = vpack.c.bf16 %v1549_v13, %v1548_v12 }
 0x9dc   :  { %2851 = vmatpush3.bf16.msra.mxu0 %v2850_v44 }
 0x9dd   :  { %2958 = vpow2.f32 %v1652_v25  ;;  %2852 = vmatprep.subr.bf16.mxu0 %v2975_v0 }
 0x9de   :  { %2960 = vtanh.f32 %v1338_v20  ;;  %v1550_v20 = vld [vmem:[%s3866_s4 + $0x3f0] sm:$0xff] }
 0x9df   :  { %v2901_v25 = vpack.c.bf16 %v1551_v19, %v1550_v20 }
 0x9e0   :  { %2854 = vmatpush3.bf16.msra.mxu0 %v2853_v53 }
 0x9e1   :  { %2879 = vmatprep.subr.bf16.mxu0 %v2975_v0 }
 0x9e7   :  { %v2959_v22 = vpop.eup %2958 }
 0x9e8   :  { %v1342_v26 = vadd.f32 1.0, %v2959_v22  ;;  %v2961_v45 = vpop.eup %2960 }
 0x9ea   :  { %2962 = vrcp.f32 %v1342_v26 }
 0x9f4   :  { %v2963_v46 = vpop.eup %2962 }
 0x9f5   :  { %v1346_v52 = vsel %vm200_vm5, %v2963_v46, %v2961_v45 }
 0x9f6   :  { %1351 = vrot.lane.b32.xlu1 %v1346_v52, %s2981_s26  ;;  %1347 = vrot.lane.b32.xlu0 %v1346_v52, %s2980_s23 }
 0x9fa   :  { %1349 = vrot.lane.b32.xlu0 %v1346_v52, %s2979_s22 }
 0xa68   :  { %v1352_v33 = vpop.permute.xlu1 %1351  ;;  %v1348_v34 = vpop.permute.xlu0 %1347 }
 0xa69   :  { %v1354_v47 = vmul.f32 %v1352_v33, %v1346_v52  ;;  %v1353_v54 = vmul.f32 %v1348_v34, %v3693_v1  ;;  %v2889_v1 = vpack.c.bf16 %v1543_v63, %v1542_v62 }
 0xa6b   :  { %v3787_v55 = vadd.f32 %v1354_v47, %v1353_v54 }
 0xa6c   :  { %v1350_v35 = vpop.permute.xlu0 %1349 }
 0xa6d   :  { %2964 = vtanh.f32 %v3787_v55 }
 0xa77   :  { %v2965_v57 = vpop.eup %2964 }
 0xa78   :  { %v1357_v58 = vmul.f32 %v2965_v57, %v1350_v35 }
 0xa7a   :  { %2441 = vmatmul.mubr.f32.vlgmr.msra.gmra.mrb[20].mxu0 %v1357_v58  ;;  %2476 = vmatmul.mubr.f32.vlgmr.msra.gmra.mrb[14].mxu1 %v1357_v58 }
 0xa7b   :  { %2510 = vmatprep.mubr.msk.f32.mxu0 %vm2976_vm1, %v2977_v6  ;;  %2881 = vmatpush3.bf16.msra.mxu0 %v2880_v60  ;;  %v1540_v6 = vld [vmem:[%s3866_s4 + $0x3a0] sm:$0xff] }
 0xa7c   :  { %2882 = vmatprep.subr.bf16.mxu0 %v2975_v0  ;;  %v2886_v32 = vpack.c.bf16 %v1541_v31, %v1540_v6 }
 0xa7f   :  { %2884 = vmatpush3.bf16.msra.mxu0 %v2883_v61 }
 0xa80   :  { %2885 = vmatprep.subr.bf16.mxu0 %v2975_v0 }
 0xa83   :  { %2887 = vmatpush3.bf16.msra.mxu0 %v2886_v32 }
 0xa84   :  { %2888 = vmatprep.subr.bf16.mxu0 %v2975_v0 }
 0xa87   :  { %2890 = vmatpush3.bf16.msra.mxu0 %v2889_v1 }
 0xa88   :  { %2891 = vmatprep.subr.bf16.mxu0 %v2975_v0 }
 0xa8b   :  { %2893 = vmatpush3.bf16.msra.mxu0 %v2892_v36 }
 0xa8c   :  { %2894 = vmatprep.subr.bf16.mxu0 %v2975_v0 }
 0xa8f   :  { %2896 = vmatpush3.bf16.msra.mxu0 %v2895_v11 }
 0xa90   :  { %2897 = vmatprep.subr.bf16.mxu0 %v2975_v0 }
 0xa93   :  { %2899 = vmatpush3.bf16.msra.mxu0 %v2898_v15 }
 0xa94   :  { %2900 = vmatprep.subr.bf16.mxu0 %v2975_v0 }
 0xa97   :  { %2902 = vmatpush3.bf16.msra.mxu0 %v2901_v25 }
 0xb4d   :  { %v1440_v3 = vpop.f32.mrb[20].mxu0  ;;  %v1512_v5 = vpop.f32.mrb[14].mxu1 }
 0xb4e   :  { %v1444_v4 = vadd.f32 %v1440_v3, %v3751_v17  ;;  %v1516_v7 = vadd.f32 %v1512_v5, %v171_v2  ;;  %v2442_v14 = vpop.f32.mrb[21].mxu0  ;;  %v2477_v18 = vpop.f32.mrb[15].mxu1 }
 0xb50   :  { %v1653_v21 = vmul.f32 -1.442695, %v1516_v7 }
 0xb52   :  { %2966 = vpow2.f32 %v1653_v21 }
 0xb53   :  { %2968 = vtanh.f32 %v1516_v7 }
 0xb5c   :  { %v2967_v24 = vpop.eup %2966 }
 0xb5d   :  { %v1520_v27 = vadd.f32 1.0, %v2967_v24  ;;  %v2969_v16 = vpop.eup %2968 }
 0xb5f   :  { %2970 = vrcp.f32 %v1520_v27 }
 0xb69   :  { %v2971_v17 = vpop.eup %2970 }
 0xb6a   :  { %v1524_v23 = vsel %vm200_vm5, %v2971_v17, %v2969_v16 }
 0xb6b   :  { %1529 = vrot.lane.b32.xlu0 %v1524_v23, %s2981_s26  ;;  %1525 = vrot.lane.b32.xlu1 %v1524_v23, %s2980_s23 }
 0xb6f   :  { %1527 = vrot.lane.b32.xlu1 %v1524_v23, %s2979_s22 }
 0xbdd   :  { %v1530_v0 = vpop.permute.xlu0 %1529  ;;  %v1526_v22 = vpop.permute.xlu1 %1525 }
 0xbde   :  { %v1532_v26 = vmul.f32 %v1530_v0, %v1524_v23  ;;  %v1531_v56 = vmul.f32 %v1526_v22, %v3787_v55 }
 0xbe0   :  { %v1533_v37 = vadd.f32 %v1532_v26, %v1531_v56 }
 0xbe1   :  { %v1528_v38 = vpop.permute.xlu1 %1527 }
 0xbe2   :  { %2972 = vtanh.f32 %v1533_v37 }
 0xbec   :  { %v2973_v28 = vpop.eup %2972 }
 0xbed   :  { %v1535_v39 = vmul.f32 %v2973_v28, %v1528_v38 }
 0xbef   :  { %2511 = vmatmul.mubr.f32.vlgmr.msra.gmra.mrb[22].mxu0 %v1535_v39 }
 0xcc2   :  { %v1618_v42 = vpop.f32.mrb[22].mxu0 }
 0xcc3   :  { %v1622_v41 = vadd.f32 %v1618_v42, %v1444_v4  ;;  %v2512_v43 = vpop.f32.mrb[23].mxu0 }
 0xcc5   :  { %v1630_v44 = vadd.f32 %v1654_v40, %v1622_v41 }
 0xcc7   :  { %1631 = vst [vmem:[%s3868_s6] sm:$0xff] %v1630_v44 }

</bundles_post_ra>
